<compile_context>
chip_gen: v6e
topology: v6e:2x2x1
jax: 0.10.0
libtpu: 0.0.40
codegen_flags: <defaults>
</compile_context>

<pallas_src>
import jax
import jax.numpy as jnp
import numpy as np
from jax.experimental import pallas as pl
from jax.experimental.pallas import tpu as pltpu

EPS = 1e-5
LANE = 128
TM_TARGET = 512                       # preferred rows per tile
TILE_BYTE_BUDGET = 16 * 1024 * 1024   # budget for one double-buffered input tile
VMEM_LIMIT = 48 * 1024 * 1024         # < v7x physical 64 MiB, > default caps


# ----------------------------- small helpers --------------------------------

def _round_up(x, m):
    return ((x + m - 1) // m) * m


def _choose_tm(m, k_max):
    """Rows per tile: >=2 grid steps (v7x megacore), ~TM_TARGET rows, capped so
    a double-buffered (TM, K) f32 input tile fits the VMEM tile budget."""
    nt = max(2, pl.cdiv(m, TM_TARGET))
    tm = _round_up(pl.cdiv(m, nt), 16)             # 16: bf16 sublane packing
    cap = max(16, (TILE_BYTE_BUDGET // (2 * 4 * max(k_max, 1))) // 16 * 16)
    return max(16, min(tm, cap, TM_TARGET, _round_up(m, 16)))


def _mosaic_params():
    return pltpu.CompilerParams(
        dimension_semantics=("parallel",),          # shard M tiles across TCs
        vmem_limit_bytes=VMEM_LIMIT)


def _row_spec(tm, k):
    # (TM, K) tile marching down the M axis; full K per tile.
    return pl.BlockSpec((tm, k), lambda i: (i, 0))


def _const_spec(shape):
    # Whole small operand, same block every grid step -> stays VMEM resident.
    zeros = (0,) * len(shape)
    return pl.BlockSpec(shape, lambda i, _z=zeros: _z)


def _stats_spec(cp):
    # One dense (8, Cp) per-tile stats block: row0 = col sum, row1 = centered SS.
    return pl.BlockSpec((8, cp), lambda i: (i, 0))


# ----------------------------- Pallas kernels -------------------------------

def _tile_stats_block(z, tile_idx, m_real, tm, cp):
    """Dense (8, Cp) stats block for this tile.
    Row 0: column sum over the valid rows.  Row 1: column sum of squares
    centered on the per-tile mean (combined exactly across tiles with Chan's
    formula in the JAX glue -> no E[z^2]-E[z]^2 cancellation)."""
    rows = jnp.minimum(tm, m_real - tile_idx * tm)            # valid rows >= 1
    rid = jax.lax.broadcasted_iota(jnp.int32, (z.shape[0], 1), 0)
    valid = rid < rows
    zm = jnp.where(valid, z, 0.0)
    s = jnp.sum(zm, axis=0, keepdims=True)                    # (1, Cp)
    mean_t = s * (1.0 / rows.astype(jnp.float32))
    zc = jnp.where(valid, z - mean_t, 0.0)
    css = jnp.sum(zc * zc, axis=0, keepdims=True)             # (1, Cp)
    sub = jax.lax.broadcasted_iota(jnp.int32, (8, cp), 0)
    return jnp.where(sub == 0, s, jnp.where(sub == 1, css, 0.0))


def _make_conv_stats_kernel(m_real, tm, cp):
    def kernel(p_ref, w_ref, z_ref, stats_ref):
        i = pl.program_id(0)
        z = jnp.dot(p_ref[...], w_ref[...], preferred_element_type=jnp.float32)
        z_ref[...] = z                                        # stash conv output
        stats_ref[...] = _tile_stats_block(z, i, m_real, tm, cp)
    return kernel


def _make_dual_conv_stats_kernel(m_real, tm, cp):
    def kernel(p2_ref, pr_ref, w2_ref, wr_ref, z2_ref, s2_ref, sr_ref):
        i = pl.program_id(0)
        z2 = jnp.dot(p2_ref[...], w2_ref[...], preferred_element_type=jnp.float32)
        zr = jnp.dot(pr_ref[...], wr_ref[...], preferred_element_type=jnp.float32)
        z2_ref[...] = z2                                      # stash conv2 output
        s2_ref[...] = _tile_stats_block(z2, i, m_real, tm, cp)
        sr_ref[...] = _tile_stats_block(zr, i, m_real, tm, cp)
    return kernel


def _bn_relu_kernel(z_ref, scale_ref, shift_ref, o_ref):
    y = jnp.maximum(z_ref[...] * scale_ref[...] + shift_ref[...], 0.0)
    o_ref[...] = y.astype(o_ref.dtype)


def _bn_add_residual_relu_kernel(z2_ref, pr_ref, wrs_ref, sc2_ref, shift_ref,
                                 o_ref):
    # residual BN scale is pre-folded into wrs; shift = sh2 + shr.
    zr = jnp.dot(pr_ref[...], wrs_ref[...], preferred_element_type=jnp.float32)
    y = z2_ref[...] * sc2_ref[...] + zr + shift_ref[...]
    o_ref[...] = jnp.maximum(y, 0.0).astype(o_ref.dtype)


# ----------------------------- kernel wrappers -------------------------------

def conv_stats_pass(p, w, tm, m, cp):
    k = p.shape[1]
    nt = pl.cdiv(m, tm)
    ce = pl.CostEstimate(
        flops=2 * m * k * cp + 8 * m * cp, transcendentals=0,
        bytes_accessed=int(p.size * p.dtype.itemsize + w.size * w.dtype.itemsize
                           + 4 * m * cp + 4 * nt * 8 * cp))
    return pl.pallas_call(
        _make_conv_stats_kernel(m, tm, cp),
        grid=(nt,),
        in_specs=[_row_spec(tm, k), _const_spec((k, cp))],
        out_specs=[_row_spec(tm, cp), _stats_spec(cp)],
        out_shape=[jax.ShapeDtypeStruct((m, cp), jnp.float32),
                   jax.ShapeDtypeStruct((nt * 8, cp), jnp.float32)],
        compiler_params=_mosaic_params(),
        cost_estimate=ce,
    )(p, w)


def dual_conv_stats_pass(p2, pr, w2, wr, tm, m, cp):
    k2, kr = p2.shape[1], pr.shape[1]
    nt = pl.cdiv(m, tm)
    ce = pl.CostEstimate(
        flops=2 * m * (k2 + kr) * cp + 16 * m * cp, transcendentals=0,
        bytes_accessed=int((p2.size + pr.size) * p2.dtype.itemsize
                           + (w2.size + wr.size) * w2.dtype.itemsize
                           + 4 * m * cp + 4 * nt * 16 * cp))
    return pl.pallas_call(
        _make_dual_conv_stats_kernel(m, tm, cp),
        grid=(nt,),
        in_specs=[_row_spec(tm, k2), _row_spec(tm, kr),
                  _const_spec((k2, cp)), _const_spec((kr, cp))],
        out_specs=[_row_spec(tm, cp), _stats_spec(cp), _stats_spec(cp)],
        out_shape=[jax.ShapeDtypeStruct((m, cp), jnp.float32),
                   jax.ShapeDtypeStruct((nt * 8, cp), jnp.float32),
                   jax.ShapeDtypeStruct((nt * 8, cp), jnp.float32)],
        compiler_params=_mosaic_params(),
        cost_estimate=ce,
    )(p2, pr, w2, wr)


def bn_relu_pass(z, scale, shift, tm, out_dtype):
    m, cp = z.shape
    nt = pl.cdiv(m, tm)
    ce = pl.CostEstimate(
        flops=3 * m * cp, transcendentals=0,
        bytes_accessed=int(4 * m * cp + 8 * cp
                           + m * cp * jnp.dtype(out_dtype).itemsize))
    return pl.pallas_call(
        _bn_relu_kernel,
        grid=(nt,),
        in_specs=[_row_spec(tm, cp), _const_spec((1, cp)), _const_spec((1, cp))],
        out_specs=_row_spec(tm, cp),
        out_shape=jax.ShapeDtypeStruct((m, cp), out_dtype),
        compiler_params=_mosaic_params(),
        cost_estimate=ce,
    )(z, scale, shift)


def bn_add_residual_relu_pass(z2, pr, wr_scaled, sc2, shift, tm):
    m, cp = z2.shape
    kr = pr.shape[1]
    nt = pl.cdiv(m, tm)
    ce = pl.CostEstimate(
        flops=2 * m * kr * cp + 5 * m * cp, transcendentals=0,
        bytes_accessed=int(8 * m * cp + pr.size * pr.dtype.itemsize
                           + wr_scaled.size * wr_scaled.dtype.itemsize + 8 * cp))
    return pl.pallas_call(
        _bn_add_residual_relu_kernel,
        grid=(nt,),
        in_specs=[_row_spec(tm, cp), _row_spec(tm, kr), _const_spec((kr, cp)),
                  _const_spec((1, cp)), _const_spec((1, cp))],
        out_specs=_row_spec(tm, cp),
        out_shape=jax.ShapeDtypeStruct((m, cp), jnp.float32),
        compiler_params=_mosaic_params(),
        cost_estimate=ce,
    )(z2, pr, wr_scaled, sc2, shift)


# ------------------------------ JAX glue -------------------------------------

def im2col(x_nhwc, kh, kw, stride, pad):
    """x: (N,H,W,C) -> (N*Ho*Wo, kh*kw*C) with (kh,kw,C) feature ordering."""
    n, h, w, c = x_nhwc.shape
    xp = jnp.pad(x_nhwc, ((0, 0), (pad, pad), (pad, pad), (0, 0)))
    ho = (h + 2 * pad - kh) // stride + 1
    wo = (w + 2 * pad - kw) // stride + 1
    cols = []
    for i in range(kh):
        for j in range(kw):
            cols.append(xp[:, i:i + stride * ho:stride,
                           j:j + stride * wo:stride, :])
    cols = jnp.stack(cols, axis=3)                      # (N,Ho,Wo,kh*kw,C)
    return cols.reshape(n * ho * wo, kh * kw * c), ho, wo


def conv_weight_to_matmul(w_oihw, cp, dtype):
    """(Cout,Cin,KH,KW) -> (KH*KW*Cin, Cp), lane-padded to Cp columns."""
    cout, cin, kh, kw = w_oihw.shape
    wm = jnp.transpose(w_oihw, (2, 3, 1, 0)).reshape(kh * kw * cin, cout)
    wm = jnp.pad(wm, ((0, 0), (0, cp - cout)))
    return wm.astype(dtype)


def _pad_vec(v, cp):
    return jnp.pad(v.astype(jnp.float32), (0, cp - v.shape[0]))


def _bn_scale_shift(stats, m, tm, gamma_p, beta_p):
    """Per-tile (sum, centered SS) -> training-mode BN scale/shift (biased
    variance, eps=1e-5) using Chan's parallel variance combination."""
    cp = stats.shape[1]
    nt = stats.shape[0] // 8
    st = stats.reshape(nt, 8, cp)
    s_t, css_t = st[:, 0, :], st[:, 1, :]
    counts = jnp.minimum(tm, m - tm * jnp.arange(nt)).astype(jnp.float32)[:, None]
    mean = jnp.sum(s_t, axis=0) / m
    mean_t = s_t / counts
    ss = jnp.sum(css_t, axis=0) + jnp.sum(
        counts * jnp.square(mean_t - mean[None, :]), axis=0)
    var = ss / m
    scale = gamma_p * jax.lax.rsqrt(var + EPS)
    shift = beta_p - mean * scale
    return scale.reshape(1, cp), shift.reshape(1, cp)


def conv_block_forward(x_nchw, params, compute_dtype=jnp.float32):
    x = jnp.transpose(x_nchw, (0, 2, 3, 1)).astype(jnp.float32)   # NHWC
    n, h, w, cin = x.shape
    cout = params["w1"].shape[0]
    cp = _round_up(cout, LANE)                  # lane-dense padded channel dim
    xc = x.astype(compute_dtype)

    # ---------- stage 1: conv1 (3x3, s2, p1) + bn1 + relu --------------------
    p1, ho, wo = im2col(xc, 3, 3, stride=2, pad=1)                # (M, 9*Cin)
    m = n * ho * wo
    tm = _choose_tm(m, k_max=max(9 * cin, 9 * cout))
    w1m = conv_weight_to_matmul(params["w1"], cp, compute_dtype)
    # Conv biases dropped everywhere: BN mean subtraction cancels them.

    z1, stats1 = conv_stats_pass(p1, w1m, tm, m, cp)              # stash z1
    sc1, sh1 = _bn_scale_shift(stats1, m, tm, _pad_vec(params["g1"], cp),
                               _pad_vec(params["bt1"], cp))
    a1p = bn_relu_pass(z1, sc1, sh1, tm, compute_dtype)           # (M, Cp)
    a1 = a1p[:, :cout].reshape(n, ho, wo, cout)

    # ---------- stage 2: conv2 (3x3, s1, p1) + bn2, residual (1x1, s2) + bn,
    #            add, relu ----------------------------------------------------
    # TODO(synk): fuse this im2col into the stage-2 pass-1 kernel (halo'd NHWC
    # row tiles + 9 shifted accumulating dots) to remove the HBM patch-matrix
    # materialization entirely.
    p2, _, _ = im2col(a1, 3, 3, stride=1, pad=1)                  # (M, 9*Cout)
    pr = xc[:, ::2, ::2, :].reshape(m, cin)                       # 1x1, stride 2
    w2m = conv_weight_to_matmul(params["w2"], cp, compute_dtype)
    wrm = conv_weight_to_matmul(params["wr"], cp, jnp.float32)

    z2, stats2, statsr = dual_conv_stats_pass(
        p2, pr, w2m, wrm.astype(compute_dtype), tm, m, cp)        # stash z2
    sc2, sh2 = _bn_scale_shift(stats2, m, tm, _pad_vec(params["g2"], cp),
                               _pad_vec(params["bt2"], cp))
    scr, shr = _bn_scale_shift(statsr, m, tm, _pad_vec(params["gr"], cp),
                               _pad_vec(params["btr"], cp))
    wr_scaled = (wrm * scr).astype(compute_dtype)   # fold residual BN scale
    outp = bn_add_residual_relu_pass(z2, pr, wr_scaled, sc2, sh2 + shr, tm)

    out = outp[:, :cout].reshape(n, ho, wo, cout)
    return jnp.transpose(out, (0, 3, 1, 2))                       # NCHW


conv_block_forward_jit = jax.jit(conv_block_forward,
                                 static_argnames=("compute_dtype",))


# ----------------------------- pure-JAX reference ----------------------------

def ref_forward(x_nchw, params):
    x = jnp.transpose(x_nchw, (0, 2, 3, 1)).astype(jnp.float32)

    def conv(inp, w_oihw, b, stride, pad):
        w_hwio = jnp.transpose(w_oihw, (2, 3, 1, 0))
        y = jax.lax.conv_general_dilated(
            inp, w_hwio, (stride, stride), ((pad, pad), (pad, pad)),
            dimension_numbers=("NHWC", "HWIO", "NHWC"))
        return y + b

    def bn(z, g, bt):
        mean = jnp.mean(z, axis=(0, 1, 2), keepdims=True)
        var = jnp.mean((z - mean) ** 2, axis=(0, 1, 2), keepdims=True)
        return (z - mean) * jax.lax.rsqrt(var + EPS) * g + bt

    h = conv(x, params["w1"], params["b1"], 2, 1)
    h = jnp.maximum(bn(h, params["g1"], params["bt1"]), 0.0)
    h = conv(h, params["w2"], params["b2"], 1, 1)
    h = bn(h, params["g2"], params["bt2"])
    r = conv(x, params["wr"], params["br"], 2, 0)
    r = bn(r, params["gr"], params["btr"])
    out = jnp.maximum(h + r, 0.0)
    return jnp.transpose(out, (0, 3, 1, 2))


# --------------------------------- main ---------------------------------------

if __name__ == "__main__":
    N, Cin, Cout, H, W = 2, 4, 8, 16, 16

    key = jax.random.PRNGKey(0)
    ks = jax.random.split(key, 13)
    params = {
        "w1": jax.random.normal(ks[0], (Cout, Cin, 3, 3), jnp.float32) * 0.1,
        "b1": jax.random.normal(ks[1], (Cout,), jnp.float32) * 0.1,
        "w2": jax.random.normal(ks[2], (Cout, Cout, 3, 3), jnp.float32) * 0.1,
        "b2": jax.random.normal(ks[3], (Cout,), jnp.float32) * 0.1,
        "wr": jax.random.normal(ks[4], (Cout, Cin, 1, 1), jnp.float32) * 0.1,
        "br": jax.random.normal(ks[5], (Cout,), jnp.float32) * 0.1,
        "g1": 1.0 + 0.1 * jax.random.normal(ks[6], (Cout,), jnp.float32),
        "bt1": 0.1 * jax.random.normal(ks[7], (Cout,), jnp.float32),
        "g2": 1.0 + 0.1 * jax.random.normal(ks[8], (Cout,), jnp.float32),
        "bt2": 0.1 * jax.random.normal(ks[9], (Cout,), jnp.float32),
        "gr": 1.0 + 0.1 * jax.random.normal(ks[10], (Cout,), jnp.float32),
        "btr": 0.1 * jax.random.normal(ks[11], (Cout,), jnp.float32),
    }

    x = jax.random.normal(ks[12], (N, Cin, H, W), jnp.float32)

    ref = jax.block_until_ready(ref_forward(x, params))

    # f32 path: strict correctness check.
    out = jax.block_until_ready(conv_block_forward_jit(x, params))
    assert out.shape == (N, Cout, H // 2, W // 2), out.shape
    np.testing.assert_allclose(np.asarray(out), np.asarray(ref),
                               rtol=1e-4, atol=1e-4)

    # bf16 MXU-input path (v6e/v7x HBM-byte / MXU-rate win); accumulation and
    # BN/ReLU math stay f32, so only input-rounding error remains -> loose tol.
    out_bf16 = jax.block_until_ready(
        conv_block_forward_jit(x, params, compute_dtype=jnp.bfloat16))
    np.testing.assert_allclose(np.asarray(out_bf16), np.asarray(ref),
                               rtol=1e-1, atol=1e-1)

    print("KERNEL_OK")
</pallas_src>

<mosaic_0001>
module attributes {stable_mosaic.version = 11 : i64} {
  func.func @kernel(%arg0: i32, %arg1: memref<64x36xf32, #tpu.memory_space<vmem>>, %arg2: memref<36x128xf32, #tpu.memory_space<vmem>>, %arg3: memref<64x128xf32, #tpu.memory_space<vmem>>, %arg4: memref<8x128xf32, #tpu.memory_space<vmem>>) attributes {dimension_semantics = [#tpu.dimension_semantics<parallel>], iteration_bounds = array<i64: 2>, scalar_prefetch = 0 : i64, scratch_operands = 0 : i64, tpu.core_type = #tpu.core_type<tc>, window_params = [{transform_indices = @transform_0, window_bounds = array<i64: 64, 36>}, {pipeline_mode = #tpu.pipeline_mode<synchronous>, transform_indices = @transform_1, window_bounds = array<i64: 36, 128>}, {transform_indices = @transform_2, window_bounds = array<i64: 64, 128>}, {transform_indices = @transform_3, window_bounds = array<i64: 8, 128>}]} {
    %c0 = arith.constant 0 : index
    %c0_0 = arith.constant 0 : index
    %0 = vector.load %arg1[%c0, %c0_0] : memref<64x36xf32, #tpu.memory_space<vmem>>, vector<64x36xf32>
    %c0_1 = arith.constant 0 : index
    %c0_2 = arith.constant 0 : index
    %1 = vector.load %arg2[%c0_1, %c0_2] : memref<36x128xf32, #tpu.memory_space<vmem>>, vector<36x128xf32>
    %cst = arith.constant dense<0.000000e+00> : vector<64x128xf32>
    %2 = tpu.matmul %0, %1, %cst {dimension_numbers = #tpu.dot_dimension_numbers<[1], [0], [0], [1], [0, 0, 1, 1], [], []>} : vector<64x36xf32>, vector<36x128xf32>, vector<64x128xf32> -> vector<64x128xf32>
    %c0_3 = arith.constant 0 : index
    %c0_4 = arith.constant 0 : index
    %3 = vector.load %arg3[%c0_3, %c0_4] : memref<64x128xf32, #tpu.memory_space<vmem>>, vector<64x128xf32>
    tpu.vector_store %arg3[%c0_3, %c0_4], %2 {strides = array<i32>} : memref<64x128xf32, #tpu.memory_space<vmem>>, vector<64x128xf32>,
    %c64_i32 = arith.constant 64 : i32
    %4 = arith.muli %arg0, %c64_i32 : i32
    %c128_i32 = arith.constant 128 : i32
    %5 = arith.subi %c128_i32, %4 : i32
    %c64_i32_5 = arith.constant 64 : i32
    %6 = arith.minsi %c64_i32_5, %5 : i32
    %7 = tpu.iota {dimensions = array<i32: 0>} : vector<64x1xi32>
    %8 = vector.broadcast %6 : i32 to vector<64x1xi32>
    %9 = arith.cmpi slt, %7, %8 : vector<64x1xi32>
    %cst_6 = arith.constant 0.000000e+00 : f32
    %10 = vector.shape_cast %9 : vector<64x1xi1> to vector<64x1xi1>
    %11 = vector.broadcast %10 : vector<64x1xi1> to vector<64x128xi1>
    %12 = vector.broadcast %cst_6 : f32 to vector<64x128xf32>
    %13 = arith.select %11, %2, %12 : vector<64x128xi1>, vector<64x128xf32>
    %cst_7 = arith.constant dense<0.000000e+00> : vector<128xf32>
    %14 = vector.multi_reduction <add>, %13, %cst_7 [0] : vector<64x128xf32> to vector<128xf32>
    %15 = vector.shape_cast %14 : vector<128xf32> to vector<1x128xf32>
    %16 = arith.sitofp %6 : i32 to f32
    %cst_8 = arith.constant 1.000000e+00 : f32
    %17 = arith.divf %cst_8, %16 : f32
    %18 = vector.broadcast %17 : f32 to vector<1x128xf32>
    %19 = arith.mulf %15, %18 : vector<1x128xf32>
    %20 = vector.broadcast %19 : vector<1x128xf32> to vector<64x128xf32>
    %21 = arith.subf %2, %20 : vector<64x128xf32>
    %cst_9 = arith.constant 0.000000e+00 : f32
    %22 = vector.shape_cast %9 : vector<64x1xi1> to vector<64x1xi1>
    %23 = vector.broadcast %22 : vector<64x1xi1> to vector<64x128xi1>
    %24 = vector.broadcast %cst_9 : f32 to vector<64x128xf32>
    %25 = arith.select %23, %21, %24 : vector<64x128xi1>, vector<64x128xf32>
    %26 = arith.mulf %25, %25 : vector<64x128xf32>
    %cst_10 = arith.constant dense<0.000000e+00> : vector<128xf32>
    %27 = vector.multi_reduction <add>, %26, %cst_10 [0] : vector<64x128xf32> to vector<128xf32>
    %28 = vector.shape_cast %27 : vector<128xf32> to vector<1x128xf32>
    %29 = tpu.iota {dimensions = array<i32: 0>} : vector<8x128xi32>
    %c0_i32 = arith.constant 0 : i32
    %30 = vector.broadcast %c0_i32 : i32 to vector<8x128xi32>
    %31 = arith.cmpi eq, %29, %30 : vector<8x128xi32>
    %c1_i32 = arith.constant 1 : i32
    %32 = vector.broadcast %c1_i32 : i32 to vector<8x128xi32>
    %33 = arith.cmpi eq, %29, %32 : vector<8x128xi32>
    %cst_11 = arith.constant 0.000000e+00 : f32
    %34 = vector.shape_cast %28 : vector<1x128xf32> to vector<1x128xf32>
    %35 = vector.broadcast %34 : vector<1x128xf32> to vector<8x128xf32>
    %36 = vector.broadcast %cst_11 : f32 to vector<8x128xf32>
    %37 = arith.select %33, %35, %36 : vector<8x128xi1>, vector<8x128xf32>
    %38 = vector.shape_cast %15 : vector<1x128xf32> to vector<1x128xf32>
    %39 = vector.broadcast %38 : vector<1x128xf32> to vector<8x128xf32>
    %40 = arith.select %31, %39, %37 : vector<8x128xi1>, vector<8x128xf32>
    %c0_12 = arith.constant 0 : index
    %c0_13 = arith.constant 0 : index
    %41 = vector.load %arg4[%c0_12, %c0_13] : memref<8x128xf32, #tpu.memory_space<vmem>>, vector<8x128xf32>
    tpu.vector_store %arg4[%c0_12, %c0_13], %40 {strides = array<i32>} : memref<8x128xf32, #tpu.memory_space<vmem>>, vector<8x128xf32>,
    return
  }
  func.func @transform_0(%arg0: i32) -> (i32, i32) {
    %c0_i32 = arith.constant 0 : i32
    %c0_i32_0 = arith.constant 0 : i32
    return %arg0, %c0_i32 : i32, i32
  }
  func.func @transform_1(%arg0: i32) -> (i32, i32) {
    %c0_i32 = arith.constant 0 : i32
    %c0_i32_0 = arith.constant 0 : i32
    %c0_i32_1 = arith.constant 0 : i32
    return %c0_i32, %c0_i32_0 : i32, i32
  }
  func.func @transform_2(%arg0: i32) -> (i32, i32) {
    %c0_i32 = arith.constant 0 : i32
    %c0_i32_0 = arith.constant 0 : i32
    return %arg0, %c0_i32 : i32, i32
  }
  func.func @transform_3(%arg0: i32) -> (i32, i32) {
    %c0_i32 = arith.constant 0 : i32
    %c0_i32_0 = arith.constant 0 : i32
    return %arg0, %c0_i32 : i32, i32
  }
}

module attributes {stable_mosaic.version = 11 : i64} {
  func.func @_bn_relu_kernel(%arg0: i32, %arg1: memref<64x128xf32, #tpu.memory_space<vmem>>, %arg2: memref<1x128xf32, #tpu.memory_space<vmem>>, %arg3: memref<1x128xf32, #tpu.memory_space<vmem>>, %arg4: memref<64x128xf32, #tpu.memory_space<vmem>>) attributes {dimension_semantics = [#tpu.dimension_semantics<parallel>], iteration_bounds = array<i64: 2>, scalar_prefetch = 0 : i64, scratch_operands = 0 : i64, tpu.core_type = #tpu.core_type<tc>, window_params = [{transform_indices = @transform_0, window_bounds = array<i64: 64, 128>}, {pipeline_mode = #tpu.pipeline_mode<synchronous>, transform_indices = @transform_1, window_bounds = array<i64: 1, 128>}, {pipeline_mode = #tpu.pipeline_mode<synchronous>, transform_indices = @transform_2, window_bounds = array<i64: 1, 128>}, {transform_indices = @transform_3, window_bounds = array<i64: 64, 128>}]} {
    %c0 = arith.constant 0 : index
    %c0_0 = arith.constant 0 : index
    %0 = vector.load %arg1[%c0, %c0_0] : memref<64x128xf32, #tpu.memory_space<vmem>>, vector<64x128xf32>
    %c0_1 = arith.constant 0 : index
    %c0_2 = arith.constant 0 : index
    %1 = vector.load %arg2[%c0_1, %c0_2] : memref<1x128xf32, #tpu.memory_space<vmem>>, vector<1x128xf32>
    %2 = vector.broadcast %1 : vector<1x128xf32> to vector<64x128xf32>
    %3 = arith.mulf %0, %2 : vector<64x128xf32>
    %c0_3 = arith.constant 0 : index
    %c0_4 = arith.constant 0 : index
    %4 = vector.load %arg3[%c0_3, %c0_4] : memref<1x128xf32, #tpu.memory_space<vmem>>, vector<1x128xf32>
    %5 = vector.broadcast %4 : vector<1x128xf32> to vector<64x128xf32>
    %6 = arith.addf %3, %5 : vector<64x128xf32>
    %cst = arith.constant 0.000000e+00 : f32
    %7 = vector.broadcast %cst : f32 to vector<64x128xf32>
    %8 = arith.maximumf %6, %7 : vector<64x128xf32>
    %c0_5 = arith.constant 0 : index
    %c0_6 = arith.constant 0 : index
    %9 = vector.load %arg4[%c0_5, %c0_6] : memref<64x128xf32, #tpu.memory_space<vmem>>, vector<64x128xf32>
    tpu.vector_store %arg4[%c0_5, %c0_6], %8 {strides = array<i32>} : memref<64x128xf32, #tpu.memory_space<vmem>>, vector<64x128xf32>,
    return
  }
  func.func @transform_0(%arg0: i32) -> (i32, i32) {
    %c0_i32 = arith.constant 0 : i32
    %c0_i32_0 = arith.constant 0 : i32
    return %arg0, %c0_i32 : i32, i32
  }
  func.func @transform_1(%arg0: i32) -> (i32, i32) {
    %c0_i32 = arith.constant 0 : i32
    %c0_i32_0 = arith.constant 0 : i32
    %c0_i32_1 = arith.constant 0 : i32
    return %c0_i32, %c0_i32_0 : i32, i32
  }
  func.func @transform_2(%arg0: i32) -> (i32, i32) {
    %c0_i32 = arith.constant 0 : i32
    %c0_i32_0 = arith.constant 0 : i32
    %c0_i32_1 = arith.constant 0 : i32
    return %c0_i32, %c0_i32_0 : i32, i32
  }
  func.func @transform_3(%arg0: i32) -> (i32, i32) {
    %c0_i32 = arith.constant 0 : i32
    %c0_i32_0 = arith.constant 0 : i32
    return %arg0, %c0_i32 : i32, i32
  }
}

module attributes {stable_mosaic.version = 11 : i64} {
  func.func @kernel(%arg0: i32, %arg1: memref<64x72xf32, #tpu.memory_space<vmem>>, %arg2: memref<64x4xf32, #tpu.memory_space<vmem>>, %arg3: memref<72x128xf32, #tpu.memory_space<vmem>>, %arg4: memref<4x128xf32, #tpu.memory_space<vmem>>, %arg5: memref<64x128xf32, #tpu.memory_space<vmem>>, %arg6: memref<8x128xf32, #tpu.memory_space<vmem>>, %arg7: memref<8x128xf32, #tpu.memory_space<vmem>>) attributes {dimension_semantics = [#tpu.dimension_semantics<parallel>], iteration_bounds = array<i64: 2>, scalar_prefetch = 0 : i64, scratch_operands = 0 : i64, tpu.core_type = #tpu.core_type<tc>, window_params = [{transform_indices = @transform_0, window_bounds = array<i64: 64, 72>}, {transform_indices = @transform_1, window_bounds = array<i64: 64, 4>}, {pipeline_mode = #tpu.pipeline_mode<synchronous>, transform_indices = @transform_2, window_bounds = array<i64: 72, 128>}, {pipeline_mode = #tpu.pipeline_mode<synchronous>, transform_indices = @transform_3, window_bounds = array<i64: 4, 128>}, {transform_indices = @transform_4, window_bounds = array<i64: 64, 128>}, {transform_indices = @transform_5, window_bounds = array<i64: 8, 128>}, {transform_indices = @transform_6, window_bounds = array<i64: 8, 128>}]} {
    %c0 = arith.constant 0 : index
    %c0_0 = arith.constant 0 : index
    %0 = vector.load %arg1[%c0, %c0_0] : memref<64x72xf32, #tpu.memory_space<vmem>>, vector<64x72xf32>
    %c0_1 = arith.constant 0 : index
    %c0_2 = arith.constant 0 : index
    %1 = vector.load %arg3[%c0_1, %c0_2] : memref<72x128xf32, #tpu.memory_space<vmem>>, vector<72x128xf32>
    %cst = arith.constant dense<0.000000e+00> : vector<64x128xf32>
    %2 = tpu.matmul %0, %1, %cst {dimension_numbers = #tpu.dot_dimension_numbers<[1], [0], [0], [1], [0, 0, 1, 1], [], []>} : vector<64x72xf32>, vector<72x128xf32>, vector<64x128xf32> -> vector<64x128xf32>
    %c0_3 = arith.constant 0 : index
    %c0_4 = arith.constant 0 : index
    %3 = vector.load %arg2[%c0_3, %c0_4] : memref<64x4xf32, #tpu.memory_space<vmem>>, vector<64x4xf32>
    %c0_5 = arith.constant 0 : index
    %c0_6 = arith.constant 0 : index
    %4 = vector.load %arg4[%c0_5, %c0_6] : memref<4x128xf32, #tpu.memory_space<vmem>>, vector<4x128xf32>
    %cst_7 = arith.constant dense<0.000000e+00> : vector<64x128xf32>
    %5 = tpu.matmul %3, %4, %cst_7 {dimension_numbers = #tpu.dot_dimension_numbers<[1], [0], [0], [1], [0, 0, 1, 1], [], []>} : vector<64x4xf32>, vector<4x128xf32>, vector<64x128xf32> -> vector<64x128xf32>
    %c0_8 = arith.constant 0 : index
    %c0_9 = arith.constant 0 : index
    %6 = vector.load %arg5[%c0_8, %c0_9] : memref<64x128xf32, #tpu.memory_space<vmem>>, vector<64x128xf32>
    tpu.vector_store %arg5[%c0_8, %c0_9], %2 {strides = array<i32>} : memref<64x128xf32, #tpu.memory_space<vmem>>, vector<64x128xf32>,
    %c64_i32 = arith.constant 64 : i32
    %7 = arith.muli %arg0, %c64_i32 : i32
    %c128_i32 = arith.constant 128 : i32
    %8 = arith.subi %c128_i32, %7 : i32
    %c64_i32_10 = arith.constant 64 : i32
    %9 = arith.minsi %c64_i32_10, %8 : i32
    %10 = tpu.iota {dimensions = array<i32: 0>} : vector<64x1xi32>
    %11 = vector.broadcast %9 : i32 to vector<64x1xi32>
    %12 = arith.cmpi slt, %10, %11 : vector<64x1xi32>
    %cst_11 = arith.constant 0.000000e+00 : f32
    %13 = vector.shape_cast %12 : vector<64x1xi1> to vector<64x1xi1>
    %14 = vector.broadcast %13 : vector<64x1xi1> to vector<64x128xi1>
    %15 = vector.broadcast %cst_11 : f32 to vector<64x128xf32>
    %16 = arith.select %14, %2, %15 : vector<64x128xi1>, vector<64x128xf32>
    %cst_12 = arith.constant dense<0.000000e+00> : vector<128xf32>
    %17 = vector.multi_reduction <add>, %16, %cst_12 [0] : vector<64x128xf32> to vector<128xf32>
    %18 = vector.shape_cast %17 : vector<128xf32> to vector<1x128xf32>
    %19 = arith.sitofp %9 : i32 to f32
    %cst_13 = arith.constant 1.000000e+00 : f32
    %20 = arith.divf %cst_13, %19 : f32
    %21 = vector.broadcast %20 : f32 to vector<1x128xf32>
    %22 = arith.mulf %18, %21 : vector<1x128xf32>
    %23 = vector.broadcast %22 : vector<1x128xf32> to vector<64x128xf32>
    %24 = arith.subf %2, %23 : vector<64x128xf32>
    %cst_14 = arith.constant 0.000000e+00 : f32
    %25 = vector.shape_cast %12 : vector<64x1xi1> to vector<64x1xi1>
    %26 = vector.broadcast %25 : vector<64x1xi1> to vector<64x128xi1>
    %27 = vector.broadcast %cst_14 : f32 to vector<64x128xf32>
    %28 = arith.select %26, %24, %27 : vector<64x128xi1>, vector<64x128xf32>
    %29 = arith.mulf %28, %28 : vector<64x128xf32>
    %cst_15 = arith.constant dense<0.000000e+00> : vector<128xf32>
    %30 = vector.multi_reduction <add>, %29, %cst_15 [0] : vector<64x128xf32> to vector<128xf32>
    %31 = vector.shape_cast %30 : vector<128xf32> to vector<1x128xf32>
    %32 = tpu.iota {dimensions = array<i32: 0>} : vector<8x128xi32>
    %c0_i32 = arith.constant 0 : i32
    %33 = vector.broadcast %c0_i32 : i32 to vector<8x128xi32>
    %34 = arith.cmpi eq, %32, %33 : vector<8x128xi32>
    %c1_i32 = arith.constant 1 : i32
    %35 = vector.broadcast %c1_i32 : i32 to vector<8x128xi32>
    %36 = arith.cmpi eq, %32, %35 : vector<8x128xi32>
    %cst_16 = arith.constant 0.000000e+00 : f32
    %37 = vector.shape_cast %31 : vector<1x128xf32> to vector<1x128xf32>
    %38 = vector.broadcast %37 : vector<1x128xf32> to vector<8x128xf32>
    %39 = vector.broadcast %cst_16 : f32 to vector<8x128xf32>
    %40 = arith.select %36, %38, %39 : vector<8x128xi1>, vector<8x128xf32>
    %41 = vector.shape_cast %18 : vector<1x128xf32> to vector<1x128xf32>
    %42 = vector.broadcast %41 : vector<1x128xf32> to vector<8x128xf32>
    %43 = arith.select %34, %42, %40 : vector<8x128xi1>, vector<8x128xf32>
    %c0_17 = arith.constant 0 : index
    %c0_18 = arith.constant 0 : index
    %44 = vector.load %arg6[%c0_17, %c0_18] : memref<8x128xf32, #tpu.memory_space<vmem>>, vector<8x128xf32>
    tpu.vector_store %arg6[%c0_17, %c0_18], %43 {strides = array<i32>} : memref<8x128xf32, #tpu.memory_space<vmem>>, vector<8x128xf32>,
    %c64_i32_19 = arith.constant 64 : i32
    %45 = arith.muli %arg0, %c64_i32_19 : i32
    %c128_i32_20 = arith.constant 128 : i32
    %46 = arith.subi %c128_i32_20, %45 : i32
    %c64_i32_21 = arith.constant 64 : i32
    %47 = arith.minsi %c64_i32_21, %46 : i32
    %48 = tpu.iota {dimensions = array<i32: 0>} : vector<64x1xi32>
    %49 = vector.broadcast %47 : i32 to vector<64x1xi32>
    %50 = arith.cmpi slt, %48, %49 : vector<64x1xi32>
    %cst_22 = arith.constant 0.000000e+00 : f32
    %51 = vector.shape_cast %50 : vector<64x1xi1> to vector<64x1xi1>
    %52 = vector.broadcast %51 : vector<64x1xi1> to vector<64x128xi1>
    %53 = vector.broadcast %cst_22 : f32 to vector<64x128xf32>
    %54 = arith.select %52, %5, %53 : vector<64x128xi1>, vector<64x128xf32>
    %cst_23 = arith.constant dense<0.000000e+00> : vector<128xf32>
    %55 = vector.multi_reduction <add>, %54, %cst_23 [0] : vector<64x128xf32> to vector<128xf32>
    %56 = vector.shape_cast %55 : vector<128xf32> to vector<1x128xf32>
    %57 = arith.sitofp %47 : i32 to f32
    %cst_24 = arith.constant 1.000000e+00 : f32
    %58 = arith.divf %cst_24, %57 : f32
    %59 = vector.broadcast %58 : f32 to vector<1x128xf32>
    %60 = arith.mulf %56, %59 : vector<1x128xf32>
    %61 = vector.broadcast %60 : vector<1x128xf32> to vector<64x128xf32>
    %62 = arith.subf %5, %61 : vector<64x128xf32>
    %cst_25 = arith.constant 0.000000e+00 : f32
    %63 = vector.shape_cast %50 : vector<64x1xi1> to vector<64x1xi1>
    %64 = vector.broadcast %63 : vector<64x1xi1> to vector<64x128xi1>
    %65 = vector.broadcast %cst_25 : f32 to vector<64x128xf32>
    %66 = arith.select %64, %62, %65 : vector<64x128xi1>, vector<64x128xf32>
    %67 = arith.mulf %66, %66 : vector<64x128xf32>
    %cst_26 = arith.constant dense<0.000000e+00> : vector<128xf32>
    %68 = vector.multi_reduction <add>, %67, %cst_26 [0] : vector<64x128xf32> to vector<128xf32>
    %69 = vector.shape_cast %68 : vector<128xf32> to vector<1x128xf32>
    %70 = tpu.iota {dimensions = array<i32: 0>} : vector<8x128xi32>
    %c0_i32_27 = arith.constant 0 : i32
    %71 = vector.broadcast %c0_i32_27 : i32 to vector<8x128xi32>
    %72 = arith.cmpi eq, %70, %71 : vector<8x128xi32>
    %c1_i32_28 = arith.constant 1 : i32
    %73 = vector.broadcast %c1_i32_28 : i32 to vector<8x128xi32>
    %74 = arith.cmpi eq, %70, %73 : vector<8x128xi32>
    %cst_29 = arith.constant 0.000000e+00 : f32
    %75 = vector.shape_cast %69 : vector<1x128xf32> to vector<1x128xf32>
    %76 = vector.broadcast %75 : vector<1x128xf32> to vector<8x128xf32>
    %77 = vector.broadcast %cst_29 : f32 to vector<8x128xf32>
    %78 = arith.select %74, %76, %77 : vector<8x128xi1>, vector<8x128xf32>
    %79 = vector.shape_cast %56 : vector<1x128xf32> to vector<1x128xf32>
    %80 = vector.broadcast %79 : vector<1x128xf32> to vector<8x128xf32>
    %81 = arith.select %72, %80, %78 : vector<8x128xi1>, vector<8x128xf32>
    %c0_30 = arith.constant 0 : index
    %c0_31 = arith.constant 0 : index
    %82 = vector.load %arg7[%c0_30, %c0_31] : memref<8x128xf32, #tpu.memory_space<vmem>>, vector<8x128xf32>
    tpu.vector_store %arg7[%c0_30, %c0_31], %81 {strides = array<i32>} : memref<8x128xf32, #tpu.memory_space<vmem>>, vector<8x128xf32>,
    return
  }
  func.func @transform_0(%arg0: i32) -> (i32, i32) {
    %c0_i32 = arith.constant 0 : i32
    %c0_i32_0 = arith.constant 0 : i32
    return %arg0, %c0_i32 : i32, i32
  }
  func.func @transform_1(%arg0: i32) -> (i32, i32) {
    %c0_i32 = arith.constant 0 : i32
    %c0_i32_0 = arith.constant 0 : i32
    return %arg0, %c0_i32 : i32, i32
  }
  func.func @transform_2(%arg0: i32) -> (i32, i32) {
    %c0_i32 = arith.constant 0 : i32
    %c0_i32_0 = arith.constant 0 : i32
    %c0_i32_1 = arith.constant 0 : i32
    return %c0_i32, %c0_i32_0 : i32, i32
  }
  func.func @transform_3(%arg0: i32) -> (i32, i32) {
    %c0_i32 = arith.constant 0 : i32
    %c0_i32_0 = arith.constant 0 : i32
    %c0_i32_1 = arith.constant 0 : i32
    return %c0_i32, %c0_i32_0 : i32, i32
  }
  func.func @transform_4(%arg0: i32) -> (i32, i32) {
    %c0_i32 = arith.constant 0 : i32
    %c0_i32_0 = arith.constant 0 : i32
    return %arg0, %c0_i32 : i32, i32
  }
  func.func @transform_5(%arg0: i32) -> (i32, i32) {
    %c0_i32 = arith.constant 0 : i32
    %c0_i32_0 = arith.constant 0 : i32
    return %arg0, %c0_i32 : i32, i32
  }
  func.func @transform_6(%arg0: i32) -> (i32, i32) {
    %c0_i32 = arith.constant 0 : i32
    %c0_i32_0 = arith.constant 0 : i32
    return %arg0, %c0_i32 : i32, i32
  }
}

module attributes {stable_mosaic.version = 11 : i64} {
  func.func @_bn_add_residual_relu_kernel(%arg0: i32, %arg1: memref<64x128xf32, #tpu.memory_space<vmem>>, %arg2: memref<64x4xf32, #tpu.memory_space<vmem>>, %arg3: memref<4x128xf32, #tpu.memory_space<vmem>>, %arg4: memref<1x128xf32, #tpu.memory_space<vmem>>, %arg5: memref<1x128xf32, #tpu.memory_space<vmem>>, %arg6: memref<64x128xf32, #tpu.memory_space<vmem>>) attributes {dimension_semantics = [#tpu.dimension_semantics<parallel>], iteration_bounds = array<i64: 2>, scalar_prefetch = 0 : i64, scratch_operands = 0 : i64, tpu.core_type = #tpu.core_type<tc>, window_params = [{transform_indices = @transform_0, window_bounds = array<i64: 64, 128>}, {transform_indices = @transform_1, window_bounds = array<i64: 64, 4>}, {pipeline_mode = #tpu.pipeline_mode<synchronous>, transform_indices = @transform_2, window_bounds = array<i64: 4, 128>}, {pipeline_mode = #tpu.pipeline_mode<synchronous>, transform_indices = @transform_3, window_bounds = array<i64: 1, 128>}, {pipeline_mode = #tpu.pipeline_mode<synchronous>, transform_indices = @transform_4, window_bounds = array<i64: 1, 128>}, {transform_indices = @transform_5, window_bounds = array<i64: 64, 128>}]} {
    %c0 = arith.constant 0 : index
    %c0_0 = arith.constant 0 : index
    %0 = vector.load %arg2[%c0, %c0_0] : memref<64x4xf32, #tpu.memory_space<vmem>>, vector<64x4xf32>
    %c0_1 = arith.constant 0 : index
    %c0_2 = arith.constant 0 : index
    %1 = vector.load %arg3[%c0_1, %c0_2] : memref<4x128xf32, #tpu.memory_space<vmem>>, vector<4x128xf32>
    %cst = arith.constant dense<0.000000e+00> : vector<64x128xf32>
    %2 = tpu.matmul %0, %1, %cst {dimension_numbers = #tpu.dot_dimension_numbers<[1], [0], [0], [1], [0, 0, 1, 1], [], []>} : vector<64x4xf32>, vector<4x128xf32>, vector<64x128xf32> -> vector<64x128xf32>
    %c0_3 = arith.constant 0 : index
    %c0_4 = arith.constant 0 : index
    %3 = vector.load %arg1[%c0_3, %c0_4] : memref<64x128xf32, #tpu.memory_space<vmem>>, vector<64x128xf32>
    %c0_5 = arith.constant 0 : index
    %c0_6 = arith.constant 0 : index
    %4 = vector.load %arg4[%c0_5, %c0_6] : memref<1x128xf32, #tpu.memory_space<vmem>>, vector<1x128xf32>
    %5 = vector.broadcast %4 : vector<1x128xf32> to vector<64x128xf32>
    %6 = arith.mulf %3, %5 : vector<64x128xf32>
    %7 = arith.addf %6, %2 : vector<64x128xf32>
    %c0_7 = arith.constant 0 : index
    %c0_8 = arith.constant 0 : index
    %8 = vector.load %arg5[%c0_7, %c0_8] : memref<1x128xf32, #tpu.memory_space<vmem>>, vector<1x128xf32>
    %9 = vector.broadcast %8 : vector<1x128xf32> to vector<64x128xf32>
    %10 = arith.addf %7, %9 : vector<64x128xf32>
    %cst_9 = arith.constant 0.000000e+00 : f32
    %11 = vector.broadcast %cst_9 : f32 to vector<64x128xf32>
    %12 = arith.maximumf %10, %11 : vector<64x128xf32>
    %c0_10 = arith.constant 0 : index
    %c0_11 = arith.constant 0 : index
    %13 = vector.load %arg6[%c0_10, %c0_11] : memref<64x128xf32, #tpu.memory_space<vmem>>, vector<64x128xf32>
    tpu.vector_store %arg6[%c0_10, %c0_11], %12 {strides = array<i32>} : memref<64x128xf32, #tpu.memory_space<vmem>>, vector<64x128xf32>,
    return
  }
  func.func @transform_0(%arg0: i32) -> (i32, i32) {
    %c0_i32 = arith.constant 0 : i32
    %c0_i32_0 = arith.constant 0 : i32
    return %arg0, %c0_i32 : i32, i32
  }
  func.func @transform_1(%arg0: i32) -> (i32, i32) {
    %c0_i32 = arith.constant 0 : i32
    %c0_i32_0 = arith.constant 0 : i32
    return %arg0, %c0_i32 : i32, i32
  }
  func.func @transform_2(%arg0: i32) -> (i32, i32) {
    %c0_i32 = arith.constant 0 : i32
    %c0_i32_0 = arith.constant 0 : i32
    %c0_i32_1 = arith.constant 0 : i32
    return %c0_i32, %c0_i32_0 : i32, i32
  }
  func.func @transform_3(%arg0: i32) -> (i32, i32) {
    %c0_i32 = arith.constant 0 : i32
    %c0_i32_0 = arith.constant 0 : i32
    %c0_i32_1 = arith.constant 0 : i32
    return %c0_i32, %c0_i32_0 : i32, i32
  }
  func.func @transform_4(%arg0: i32) -> (i32, i32) {
    %c0_i32 = arith.constant 0 : i32
    %c0_i32_0 = arith.constant 0 : i32
    %c0_i32_1 = arith.constant 0 : i32
    return %c0_i32, %c0_i32_0 : i32, i32
  }
  func.func @transform_5(%arg0: i32) -> (i32, i32) {
    %c0_i32 = arith.constant 0 : i32
    %c0_i32_0 = arith.constant 0 : i32
    return %arg0, %c0_i32 : i32, i32
  }
}

</mosaic_0001>

<bundles_post_ra>
// kernel: conv_block_forward.5
= control target key start
LH: loop header
LB: loop body
LE: loop exit
PB: predicated region body
PF: predicated region fallthrough
CT: control target
= control target key end

     0   :  { %s333_s12 = smov 0   ;;  %s356_s0 = inlined_call_operand.vmem [shape: f32[128,128], index: 0, kind: input, shape index: {}]   ;;  %s357_s1 = inlined_call_operand.vmem [shape: f32[1,128], index: 1, kind: input, shape index: {}]   ;;  %s358_s2 = inlined_call_operand.vmem [shape: f32[1,128], index: 2, kind: input, shape index: {}]   ;;  %s359_s3 = inlined_call_operand.vmem [shape: f32[128,128], index: 3, kind: output, shape index: {}]  }
   0x1 LB: > { %s284_s13 = sadd.s32 4294967295, %s311_s12   ;;  %p288_p0 = scmp.ge.s32.totalorder %s311_s12, 1  ;;  %s311_s12 = sphi %s333_s12, %s13_s12  }
   0x2   : > { %p138_p1 = scmp.lt.s32.totalorder %s311_s12, 3 }
   0x4   : > { %p139_p2 = pnand %p288_p0, %p138_p1 }
   0x5   : > { %s289_s14 = sshll.u32 (!%p139_p2), %s284_s13, 3 }
   0x6   : > { %142 = sbr.rel (%p139_p2) target bundleno = 25 (0x19), region = 32  ;;  %p163_p3 = scmp.lt.s32.totalorder (!%p139_p2), %s289_s14, 15 }
   0xb   : > { %s361_s14 = smov (!%p163_p3, %s289_s14), 15  ;;  %v293_v0 = vld [vmem:[%s357_s1] ss:$0 sm:$0xff] }
   0xc   : > { %s290_s15 = sshll.u32 %s361_s14, 3  ;;  %v294_v1 = vld [vmem:[%s358_s2] ss:$0 sm:$0xff] }
   0xd   : > { %s166_s20 = scalar_lea.vmem %s356_s0, %s290_s15  ;;  %s172_s25 = scalar_lea.vmem %s359_s3, %s290_s15 }
   0xe   : > { %v174_v2 = vld [vmem:[%s166_s20] sm:$0xff]  ;;  %v175_v3 = vld [vmem:[%s166_s20 + $0x8] sm:$0xff]  ;;  %v176_v4 = vld [vmem:[%s166_s20 + $0x10] sm:$0xff] }
   0xf   : > { %v189_v5 = vmul.f32 %v293_v0, %v174_v2  ;;  %v190_v6 = vmul.f32 %v293_v0, %v175_v3  ;;  %v191_v7 = vmul.f32 %v293_v0, %v176_v4  ;;  %v177_v8 = vld [vmem:[%s166_s20 + $0x18] sm:$0xff]  ;;  %v178_v9 = vld [vmem:[%s166_s20 + $0x20] sm:$0xff]  ;;  %v179_v10 = vld [vmem:[%s166_s20 + $0x28] sm:$0xff] }
  0x10   : > { %v192_v11 = vmul.f32 %v293_v0, %v177_v8  ;;  %v193_v12 = vmul.f32 %v293_v0, %v178_v9  ;;  %v194_v13 = vmul.f32 %v293_v0, %v179_v10  ;;  %v180_v14 = vld [vmem:[%s166_s20 + $0x30] sm:$0xff]  ;;  %v181_v15 = vld [vmem:[%s166_s20 + $0x38] sm:$0xff] }
  0x11   : > { %v204_v16 = vadd.f32 %v294_v1, %v189_v5  ;;  %v205_v17 = vadd.f32 %v294_v1, %v190_v6  ;;  %v206_v18 = vadd.f32 %v294_v1, %v191_v7  ;;  %v195_v19 = vmul.f32 %v293_v0, %v180_v14 }
  0x12   : > { %v207_v20 = vadd.f32 %v294_v1, %v192_v11  ;;  %v208_v21 = vadd.f32 %v294_v1, %v193_v12  ;;  %v209_v22 = vadd.f32 %v294_v1, %v194_v13  ;;  %v196_v23 = vmul.f32 %v293_v0, %v181_v15 }
  0x13   : > { %v212_v24 = vmax.f32 %v204_v16, 0.0  ;;  %v213_v25 = vmax.f32 %v205_v17, 0.0  ;;  %v214_v26 = vmax.f32 %v206_v18, 0.0  ;;  %v210_v27 = vadd.f32 %v294_v1, %v195_v19 }
  0x14   : > { %v215_v28 = vmax.f32 %v207_v20, 0.0  ;;  %v216_v29 = vmax.f32 %v208_v21, 0.0  ;;  %v217_v30 = vmax.f32 %v209_v22, 0.0  ;;  %v211_v31 = vadd.f32 %v294_v1, %v196_v23 }
  0x15   : > { %220 = vst [vmem:[%s172_s25] sm:$0xff] %v212_v24  ;;  %221 = vst [vmem:[%s172_s25 + $0x8] sm:$0xff] %v213_v25  ;;  %v218_v32 = vmax.f32 %v210_v27, 0.0 }
  0x16   : > { %222 = vst [vmem:[%s172_s25 + $0x10] sm:$0xff] %v214_v26  ;;  %223 = vst [vmem:[%s172_s25 + $0x18] sm:$0xff] %v215_v28  ;;  %v219_v33 = vmax.f32 %v211_v31, 0.0 }
  0x17   : > { %224 = vst [vmem:[%s172_s25 + $0x20] sm:$0xff] %v216_v29  ;;  %225 = vst [vmem:[%s172_s25 + $0x28] sm:$0xff] %v217_v30 }
  0x18   : > { %226 = vst [vmem:[%s172_s25 + $0x30] sm:$0xff] %v218_v32  ;;  %227 = vst [vmem:[%s172_s25 + $0x38] sm:$0xff] %v219_v33 }
  0x19 PF: > { %s13_s12 = sadd.s32 1, %s311_s12  }
  0x1a   : > { %p10_p4 = scmp.ge.s32.totalorder %s13_s12, 4  }
  0x1c   :  { %12 = sbr.rel (!%p10_p4) target bundleno = 1 (0x1), region = 62 }

// kernel: conv_block_forward.4
= control target key start
LH: loop header
LB: loop body
LE: loop exit
PB: predicated region body
PF: predicated region fallthrough
CT: control target
= control target key end

     0   :  { %s641_s12 = smov 0   ;;  %s772_s0 = inlined_call_operand.vmem [shape: f32[128,36], index: 0, kind: input, shape index: {}]   ;;  %s773_s1 = inlined_call_operand.vmem [shape: f32[36,128], index: 1, kind: input, shape index: {}]   ;;  %s774_s2 = inlined_call_operand.vmem [shape: f32[128,128], index: 2, kind: output, shape index: {0}]   ;;  %s775_s3 = inlined_call_operand.vmem [shape: f32[16,128], index: 3, kind: output, shape index: {1}]  }
   0x1 LB: > { %s647_s13 = sadd.s32 4294967295, %s619_s12   ;;  %p538_p0 = scmp.ge.s32.totalorder %s619_s12, 1  ;;  %s619_s12 = sphi %s641_s12, %s14_s12  }
   0x2   : > { %p141_p1 = scmp.lt.s32.totalorder %s619_s12, 3 }
   0x4   : > { %p142_p2 = pnand %p538_p0, %p141_p1 }
   0x5   : > { %s539_s18 = sshll.u32 (!%p142_p2), %s647_s13, 3  ;;  %s553_s19 = sshll.u32 (!%p142_p2), %s647_s13, 6 }
   0x6   : > { %145 = sbr.rel (%p142_p2) target bundleno = 282 (0x11a), region = 28  ;;  %p170_p3 = scmp.lt.s32.totalorder (!%p142_p2), %s539_s18, 15 }
   0x7   : > { %s341_s22 = ssub.s32 (!%p142_p2), 128, %s553_s19  ;;  %p181_p5 = scmp.lt.s32.totalorder (!%p142_p2), %s647_s13, 1 }
   0x8   : > { %p342_p4 = scmp.lt.s32.totalorder (!%p142_p2), %s341_s22, 64 }
   0xb   : > { %v197_v0 = vld [vmem:[%s773_s1 + $0x20] sm:$0xf]  ;;  %vm223_vm0 = vcmask 1043456   ;;  %v196_v1 = vld [vmem:[%s773_s1 + $0x18] sm:$0xff]  ;;  %v195_v2 = vld [vmem:[%s773_s1 + $0x10] sm:$0xff]  ;;  %s777_s18 = smov (!%p170_p3, %s539_s18), 15  ;;  %v344_v15 = vlaneseq }
   0xc   : > { %569 = vmatprep.subr.msk.mxu0 %vm223_vm0, %v197_v0  ;;  %591 = vmatprep.subr.msk.mxu1 %vm223_vm0, %v197_v0  ;;  %v194_v3 = vld [vmem:[%s773_s1 + $0x8] sm:$0xff]  ;;  %s540_s25 = sshll.u32 %s777_s18, 3  ;;  %vm198_vm1 = vcmask 293888   ;;  %v193_v4 = vld [vmem:[%s773_s1] sm:$0xff]  ;;  %s779_s22 = smov (!%p342_p4, %s341_s22), 64 }
   0xd   : > { %570 = vmatpush3.msk.msra.mxu0 %vm223_vm0, %v197_v0  ;;  %596 = vmatpush3.msk.msra.mxu1 %vm223_vm0, %v197_v0  ;;  %s173_s30 = scalar_lea.vmem %s772_s0, %s540_s25  ;;  %s399_s4 = scvt.s32.f32 %s779_s22  ;;  %v687_v16 = vshrl.u32 %v344_v15, 7  ;;  %v698_v18 = vstv %s779_s22 }
   0xe   : > { %571 = vmatprep.subr.mxu0 %v196_v1  ;;  %592 = vmatprep.subr.mxu1 %v196_v1  ;;  %v185_v5 = vld [vmem:[%s173_s30] sm:$0xff]  ;;  %v186_v6 = vld [vmem:[%s173_s30 + $0x8] sm:$0xff]  ;;  %v187_v7 = vld [vmem:[%s173_s30 + $0x10] sm:$0xff]  ;;  %s694_s7 = scalar_lea.vmem %s774_s2, %s540_s25  ;;  %s781_s13 = smov (!%p181_p5, %s647_s13), 1 }
   0xf   : > { %572 = vmatpush3.msra.mxu0 %v196_v1  ;;  %597 = vmatpush3.msra.mxu1 %v196_v1  ;;  %v189_v8 = vld [vmem:[%s173_s30 + $0x20] sm:$0xff]  ;;  %v190_v9 = vld [vmem:[%s173_s30 + $0x28] sm:$0xff]  ;;  %v191_v10 = vld [vmem:[%s173_s30 + $0x30] sm:$0xff]  ;;  %v400_v11 = vstv %s399_s4  ;;  %v346_v17 = vadd.s32 8, %v687_v16  ;;  %vm354_vm2 = vcmp.lt.s32.totalorder %v687_v16, %v698_v18  ;;  %v347_v20 = vadd.s32 16, %v687_v16  ;;  %s543_s9 = sshll.u32 %s781_s13, 3 }
  0x10   : > { %573 = vmatprep.subr.mxu0 %v195_v2  ;;  %593 = vmatprep.subr.mxu1 %v195_v2  ;;  %v188_v12 = vld [vmem:[%s173_s30 + $0x18] sm:$0xff]  ;;  %611 = vrcp.f32 %v400_v11  ;;  %v348_v22 = vadd.s32 24, %v687_v16  ;;  %v349_v27 = vadd.s32 32, %v687_v16  ;;  %v350_v31 = vadd.s32 40, %v687_v16  ;;  %s184_s14 = scalar_lea.vmem %s775_s3, %s543_s9 }
  0x11   : > { %574 = vmatpush3.msra.mxu0 %v195_v2  ;;  %598 = vmatpush3.msra.mxu1 %v195_v2  ;;  %v192_v13 = vld [vmem:[%s173_s30 + $0x38] sm:$0xff]  ;;  %vm355_vm3 = vcmp.lt.s32.totalorder %v346_v17, %v698_v18  ;;  %vm356_vm4 = vcmp.lt.s32.totalorder %v347_v20, %v698_v18  ;;  %v351_v36 = vadd.s32 48, %v687_v16  ;;  %v352_v39 = vadd.s32 56, %v687_v16 }
  0x12   : > { %575 = vmatprep.subr.mxu0 %v194_v3  ;;  %594 = vmatprep.subr.mxu1 %v194_v3  ;;  %vm357_vm5 = vcmp.lt.s32.totalorder %v348_v22, %v698_v18  ;;  %vm358_vm6 = vcmp.lt.s32.totalorder %v349_v27, %v698_v18  ;;  %vm359_vm7 = vcmp.lt.s32.totalorder %v350_v31, %v698_v18  ;;  %vm443_vm10 = vcmp.eq.s32.totalorder %v687_v16, 1 }
  0x13   : > { %576 = vmatpush3.msra.mxu0 %v194_v3  ;;  %579 = vmatprep.mubr.msk.f32.mxu0 %vm198_vm1, %v185_v5  ;;  %vm360_vm8 = vcmp.lt.s32.totalorder %v351_v36, %v698_v18  ;;  %vm361_vm9 = vcmp.lt.s32.totalorder %v352_v39, %v698_v18  ;;  %vm442_vm11 = vcmp.eq.s32.totalorder %v687_v16, 0 }
  0x14   : > { %577 = vmatprep.subr.mxu0 %v193_v4  ;;  %599 = vmatpush3.msra.mxu1 %v194_v3 }
  0x15   : > { %578 = vmatpush3.msra.mxu0 %v193_v4  ;;  %595 = vmatprep.subr.mxu1 %v193_v4 }
  0x16   : > { %580 = vmatmul.mubr.msk.f32.vlgmr.msra.gmra.mxu0 %vm198_vm1, %v186_v6  ;;  %600 = vmatpush3.msra.mxu1 %v193_v4 }
  0x17   : > { %582 = vmatprep.mubr.msk.f32.mxu0 %vm198_vm1, %v187_v7  ;;  %585 = vmatprep.mubr.msk.f32.mxu1 %vm198_vm1, %v189_v8 }
  0x18   : > { %586 = vmatmul.mubr.msk.f32.vlgmr.msra.gmra.mxu1 %vm198_vm1, %v190_v9 }
  0x19   : > { %588 = vmatprep.mubr.msk.f32.mxu1 %vm198_vm1, %v191_v10 }
  0x1a   : > { %583 = vmatmul.mubr.msk.f32.gmra.mxu0 %vm198_vm1, %v188_v12 }
  0x1c   : > { %589 = vmatmul.mubr.msk.f32.gmra.mxu1 %vm198_vm1, %v192_v13 }
  0x1d   : > { %v612_v14 = vpop.eup %611 }
  0x1e   : > { %601 = vpush %v612_v14 }
  0x4f   : > { %s602_s8 = spop %601 }
  0x50   : > { %v403_v53 = vstv %s602_s8 }
  0xd6   : > { %v581_v19 = vpop.f32.mrf.mxu0 }
  0xd7   : > { %333 = vst [vmem:[%s694_s7 + $0x8] sm:$0xff] %v581_v19  ;;  %v379_v28 = vsel %vm355_vm3, %v581_v19, 0.0 }
  0xd8   : > { %v293_v21 = vpop.f32.mrf.mxu0  ;;  %v706_v23 = vpop.f32.mrf.mxu1 }
  0xd9   : > { %332 = vst [vmem:[%s694_s7] sm:$0xff] %v293_v21  ;;  %v378_v24 = vsel %vm354_vm2, %v293_v21, 0.0  ;;  %337 = vst [vmem:[%s694_s7 + $0x28] sm:$0xff] %v706_v23  ;;  %v383_v42 = vsel %vm359_vm7, %v706_v23, 0.0 }
  0xda   : > { %v584_v25 = vpop.f32.mrf.mxu0  ;;  %v313_v26 = vpop.f32.mrf.mxu1  ;;  %v386_v29 = vadd.f32 %v379_v28, %v378_v24 }
  0xdb   : > { %335 = vst [vmem:[%s694_s7 + $0x18] sm:$0xff] %v584_v25  ;;  %336 = vst [vmem:[%s694_s7 + $0x20] sm:$0xff] %v313_v26  ;;  %v381_v37 = vsel %vm357_vm5, %v584_v25, 0.0  ;;  %v382_v40 = vsel %vm358_vm6, %v313_v26, 0.0 }
  0xdc   : > { %v303_v30 = vpop.f32.mrf.mxu0  ;;  %v590_v32 = vpop.f32.mrf.mxu1 }
  0xdd   : > { %334 = vst [vmem:[%s694_s7 + $0x10] sm:$0xff] %v303_v30  ;;  %v380_v33 = vsel %vm356_vm4, %v303_v30, 0.0  ;;  %339 = vst [vmem:[%s694_s7 + $0x38] sm:$0xff] %v590_v32  ;;  %v385_v46 = vsel %vm361_vm9, %v590_v32, 0.0 }
  0xde   : > { %v387_v34 = vadd.f32 %v386_v29, %v380_v33  ;;  %v323_v35 = vpop.f32.mrf.mxu1 }
  0xdf   : > { %338 = vst [vmem:[%s694_s7 + $0x30] sm:$0xff] %v323_v35  ;;  %v384_v44 = vsel %vm360_vm8, %v323_v35, 0.0 }
  0xe0   : > { %v388_v38 = vadd.f32 %v387_v34, %v381_v37 }
  0xe2   : > { %v389_v41 = vadd.f32 %v388_v38, %v382_v40 }
  0xe4   : > { %v390_v43 = vadd.f32 %v389_v41, %v383_v42 }
  0xe6   : > { %v391_v45 = vadd.f32 %v390_v43, %v384_v44 }
  0xe8   : > { %v392_v47 = vadd.f32 %v391_v45, %v385_v46 }
  0xea   : > { %v393_v48 = vrot.slane %v392_v47, 4 }
  0xec   : > { %v394_v49 = vadd.f32 %v393_v48, %v392_v47 }
  0xee   : > { %v395_v50 = vrot.slane %v394_v49, 2 }
  0xf0   : > { %v396_v51 = vadd.f32 %v395_v50, %v394_v49 }
  0xf2   : > { %v397_v52 = vrot.slane %v396_v51, 1 }
  0xf4   : > { %v398_v54 = vadd.f32 %v397_v52, %v396_v51 }
  0xf6   : > { %v404_v55 = vmul.f32 %v403_v53, %v398_v54 }
  0xf8   : > { %v405_v56 = vsub.f32 %v293_v21, %v404_v55  ;;  %v406_v57 = vsub.f32 %v581_v19, %v404_v55  ;;  %v407_v58 = vsub.f32 %v303_v30, %v404_v55  ;;  %v408_v59 = vsub.f32 %v584_v25, %v404_v55 }
  0xf9   : > { %v409_v62 = vsub.f32 %v313_v26, %v404_v55  ;;  %v410_v2 = vsub.f32 %v706_v23, %v404_v55  ;;  %v411_v6 = vsub.f32 %v323_v35, %v404_v55  ;;  %v412_v10 = vsub.f32 %v590_v32, %v404_v55 }
  0xfa   : > { %v413_v60 = vsel %vm354_vm2, %v405_v56, 0.0  ;;  %v414_v61 = vsel %vm355_vm3, %v406_v57, 0.0  ;;  %v415_v63 = vsel %vm356_vm4, %v407_v58, 0.0  ;;  %v416_v3 = vsel %vm357_vm5, %v408_v59, 0.0 }
  0xfb   : > { %v421_v0 = vmul.f32 %v413_v60, %v413_v60  ;;  %v422_v1 = vmul.f32 %v414_v61, %v414_v61  ;;  %v423_v4 = vmul.f32 %v415_v63, %v415_v63  ;;  %v417_v7 = vsel %vm358_vm6, %v409_v62, 0.0 }
  0xfc   : > { %v424_v8 = vmul.f32 %v416_v3, %v416_v3  ;;  %v418_v11 = vsel %vm359_vm7, %v410_v2, 0.0  ;;  %v425_v12 = vmul.f32 %v417_v7, %v417_v7  ;;  %v419_v14 = vsel %vm360_vm8, %v411_v6, 0.0 }
  0xfd   : > { %v429_v5 = vadd.f32 %v422_v1, %v421_v0  ;;  %v426_v15 = vmul.f32 %v418_v11, %v418_v11  ;;  %v420_v19 = vsel %vm361_vm9, %v412_v10, 0.0  ;;  %v427_v20 = vmul.f32 %v419_v14, %v419_v14 }
  0xfe   : > { %v428_v22 = vmul.f32 %v420_v19, %v420_v19 }
  0xff   : > { %v430_v9 = vadd.f32 %v429_v5, %v423_v4 }
 0x101   : > { %v431_v13 = vadd.f32 %v430_v9, %v424_v8 }
 0x103   : > { %v432_v17 = vadd.f32 %v431_v13, %v425_v12 }
 0x105   : > { %v433_v21 = vadd.f32 %v432_v17, %v426_v15 }
 0x107   : > { %v434_v23 = vadd.f32 %v433_v21, %v427_v20 }
 0x109   : > { %v435_v24 = vadd.f32 %v434_v23, %v428_v22 }
 0x10b   : > { %v436_v25 = vrot.slane %v435_v24, 4 }
 0x10d   : > { %v437_v26 = vadd.f32 %v436_v25, %v435_v24 }
 0x10f   : > { %v438_v27 = vrot.slane %v437_v26, 2 }
 0x111   : > { %v439_v28 = vadd.f32 %v438_v27, %v437_v26 }
 0x113   : > { %v440_v29 = vrot.slane %v439_v28, 1 }
 0x115   : > { %v441_v30 = vadd.f32 %v440_v29, %v439_v28 }
 0x117   : > { %v444_v18 = vsel %vm443_vm10, %v441_v30, 0.0 }
 0x118   : > { %v445_v31 = vsel %vm442_vm11, %v398_v54, %v444_v18 }
 0x119   : > { %446 = vst [vmem:[%s184_s14] sm:$0xff] %v445_v31 }
 0x11a PF: > { %s14_s12 = sadd.s32 1, %s619_s12  }
 0x11b   : > { %p11_p6 = scmp.ge.s32.totalorder %s14_s12, 4  }
 0x11d   :  { %13 = sbr.rel (!%p11_p6) target bundleno = 1 (0x1), region = 70 }

// kernel: conv_block_forward.7
= control target key start
LH: loop header
LB: loop body
LE: loop exit
PB: predicated region body
PF: predicated region fallthrough
CT: control target
= control target key end

     0   :  { %s618_s18 = smov 0   ;;  %s660_s0 = inlined_call_operand.vmem [shape: f32[128,128], index: 0, kind: input, shape index: {}]   ;;  %s661_s1 = inlined_call_operand.vmem [shape: f32[128,4], index: 1, kind: input, shape index: {}]   ;;  %s662_s2 = inlined_call_operand.vmem [shape: f32[4,128], index: 2, kind: input, shape index: {}]   ;;  %s663_s3 = inlined_call_operand.vmem [shape: f32[1,128], index: 3, kind: input, shape index: {}]   ;;  %s664_s4 = inlined_call_operand.vmem [shape: f32[1,128], index: 4, kind: input, shape index: {}]   ;;  %s665_s5 = inlined_call_operand.vmem [shape: f32[128,128], index: 5, kind: output, shape index: {}]  }
   0x1 LB: > { %s523_s19 = sadd.s32 4294967295, %s586_s18   ;;  %p527_p0 = scmp.ge.s32.totalorder %s586_s18, 1  ;;  %s586_s18 = sphi %s618_s18, %s15_s18  }
   0x2   : > { %p199_p1 = scmp.lt.s32.totalorder %s586_s18, 3 }
   0x4   : > { %p200_p2 = pnand %p527_p0, %p199_p1 }
   0x5   : > { %s528_s22 = sshll.u32 (!%p200_p2), %s523_s19, 3 }
   0x6   : > { %203 = sbr.rel (%p200_p2) target bundleno = 223 (0xdf), region = 40  ;;  %p233_p3 = scmp.lt.s32.totalorder (!%p200_p2), %s528_s22, 15 }
   0xb   : > { %v258_v0 = vld [vmem:[%s662_s2] sm:$0xf]  ;;  %vm284_vm0 = vcmask 1043456   ;;  %s667_s22 = smov (!%p233_p3, %s528_s22), 15  ;;  %vm259_vm1 = vcmask 31744  }
   0xc   : > { %556 = vmatprep.subr.msk.mxu0 %vm284_vm0, %v258_v0  ;;  %570 = vmatprep.subr.msk.mxu1 %vm284_vm0, %v258_v0  ;;  %s629_s23 = sshll.u32 %s667_s22, 3  ;;  %v543_v10 = vld [vmem:[%s663_s3] ss:$0 sm:$0xff] }
   0xd   : > { %557 = vmatpush3.msk.msra.mxu0 %vm284_vm0, %v258_v0  ;;  %571 = vmatpush3.msk.msra.mxu1 %vm284_vm0, %v258_v0  ;;  %s242_s26 = scalar_lea.vmem %s661_s1, %s629_s23  ;;  %s236_s29 = scalar_lea.vmem %s660_s0, %s629_s23  ;;  %v544_v23 = vld [vmem:[%s664_s4] ss:$0 sm:$0xff] }
   0xe   : > { %v250_v1 = vld [vmem:[%s242_s26] sm:$0xff]  ;;  %v251_v3 = vld [vmem:[%s242_s26 + $0x8] sm:$0xff]  ;;  %v252_v5 = vld [vmem:[%s242_s26 + $0x10] sm:$0xff]  ;;  %s248_s11 = scalar_lea.vmem %s665_s5, %s629_s23 }
   0xf   : > { %v254_v2 = vld [vmem:[%s242_s26 + $0x20] sm:$0xff]  ;;  %558 = vmatprep.mubr.msk.f32.mxu0 %vm259_vm1, %v250_v1  ;;  %v255_v4 = vld [vmem:[%s242_s26 + $0x28] sm:$0xff]  ;;  %v256_v6 = vld [vmem:[%s242_s26 + $0x30] sm:$0xff] }
  0x10   : > { %564 = vmatprep.mubr.msk.f32.mxu1 %vm259_vm1, %v254_v2  ;;  %559 = vmatmul.mubr.msk.f32.vlgmr.msra.gmra.mxu0 %vm259_vm1, %v251_v3  ;;  %v253_v7 = vld [vmem:[%s242_s26 + $0x18] sm:$0xff]  ;;  %v394_v9 = vld [vmem:[%s236_s29 + $0x8] sm:$0xff]  ;;  %v393_v12 = vld [vmem:[%s236_s29] sm:$0xff] }
  0x11   : > { %565 = vmatmul.mubr.msk.f32.vlgmr.msra.gmra.mxu1 %vm259_vm1, %v255_v4  ;;  %561 = vmatprep.mubr.msk.f32.mxu0 %vm259_vm1, %v252_v5  ;;  %v257_v8 = vld [vmem:[%s242_s26 + $0x38] sm:$0xff]  ;;  %v398_v11 = vld [vmem:[%s236_s29 + $0x28] sm:$0xff]  ;;  %v397_v13 = vld [vmem:[%s236_s29 + $0x20] sm:$0xff]  ;;  %v409_v14 = vmul.f32 %v543_v10, %v394_v9  ;;  %v408_v17 = vmul.f32 %v543_v10, %v393_v12 }
  0x12   : > { %567 = vmatprep.mubr.msk.f32.mxu1 %vm259_vm1, %v256_v6  ;;  %v413_v15 = vmul.f32 %v543_v10, %v398_v11  ;;  %v396_v16 = vld [vmem:[%s236_s29 + $0x18] sm:$0xff]  ;;  %v412_v18 = vmul.f32 %v543_v10, %v397_v13  ;;  %v395_v20 = vld [vmem:[%s236_s29 + $0x10] sm:$0xff] }
  0x13   : > { %v400_v19 = vld [vmem:[%s236_s29 + $0x38] sm:$0xff]  ;;  %v399_v21 = vld [vmem:[%s236_s29 + $0x30] sm:$0xff]  ;;  %v411_v29 = vmul.f32 %v543_v10, %v396_v16  ;;  %v410_v31 = vmul.f32 %v543_v10, %v395_v20 }
  0x14   : > { %562 = vmatmul.mubr.msk.f32.gmra.mxu0 %vm259_vm1, %v253_v7  ;;  %v415_v30 = vmul.f32 %v543_v10, %v400_v19  ;;  %v414_v32 = vmul.f32 %v543_v10, %v399_v21 }
  0x15   : > { %568 = vmatmul.mubr.msk.f32.gmra.mxu1 %vm259_vm1, %v257_v8 }
  0xd0   : > { %v560_v22 = vpop.f32.mrf.mxu0 }
  0xd1   : > { %v566_v24 = vpop.f32.mrf.mxu1  ;;  %v417_v25 = vadd.f32 %v560_v22, %v409_v14 }
  0xd2   : > { %v421_v26 = vadd.f32 %v566_v24, %v413_v15  ;;  %v354_v27 = vpop.f32.mrf.mxu0 }
  0xd3   : > { %v374_v28 = vpop.f32.mrf.mxu1  ;;  %v432_v33 = vadd.f32 %v544_v23, %v417_v25  ;;  %v416_v35 = vadd.f32 %v408_v17, %v354_v27 }
  0xd4   : > { %v436_v34 = vadd.f32 %v544_v23, %v421_v26  ;;  %v420_v36 = vadd.f32 %v412_v18, %v374_v28  ;;  %v563_v37 = vpop.f32.mrf.mxu0 }
  0xd5   : > { %v569_v38 = vpop.f32.mrf.mxu1  ;;  %v440_v39 = vmax.f32 %v432_v33, 0.0  ;;  %v431_v41 = vadd.f32 %v544_v23, %v416_v35  ;;  %v419_v43 = vadd.f32 %v563_v37, %v411_v29 }
  0xd6   : > { %v444_v40 = vmax.f32 %v436_v34, 0.0  ;;  %v435_v42 = vadd.f32 %v544_v23, %v420_v36  ;;  %v423_v44 = vadd.f32 %v569_v38, %v415_v30  ;;  %v364_v45 = vpop.f32.mrf.mxu0 }
  0xd7   : > { %v384_v46 = vpop.f32.mrf.mxu1  ;;  %448 = vst [vmem:[%s248_s11 + $0x8] sm:$0xff] %v440_v39  ;;  %v439_v47 = vmax.f32 %v431_v41, 0.0  ;;  %v418_v49 = vadd.f32 %v410_v31, %v364_v45  ;;  %v434_v51 = vadd.f32 %v544_v23, %v419_v43 }
  0xd8   : > { %452 = vst [vmem:[%s248_s11 + $0x28] sm:$0xff] %v444_v40  ;;  %v443_v48 = vmax.f32 %v435_v42, 0.0  ;;  %v422_v50 = vadd.f32 %v414_v32, %v384_v46  ;;  %v438_v52 = vadd.f32 %v544_v23, %v423_v44 }
  0xd9   : > { %447 = vst [vmem:[%s248_s11] sm:$0xff] %v439_v47  ;;  %v433_v53 = vadd.f32 %v544_v23, %v418_v49  ;;  %v442_v55 = vmax.f32 %v434_v51, 0.0 }
  0xda   : > { %451 = vst [vmem:[%s248_s11 + $0x20] sm:$0xff] %v443_v48  ;;  %v437_v54 = vadd.f32 %v544_v23, %v422_v50  ;;  %v446_v56 = vmax.f32 %v438_v52, 0.0 }
  0xdb   : > { %v441_v57 = vmax.f32 %v433_v53, 0.0  ;;  %450 = vst [vmem:[%s248_s11 + $0x18] sm:$0xff] %v442_v55 }
  0xdc   : > { %v445_v58 = vmax.f32 %v437_v54, 0.0  ;;  %454 = vst [vmem:[%s248_s11 + $0x38] sm:$0xff] %v446_v56 }
  0xdd   : > { %449 = vst [vmem:[%s248_s11 + $0x10] sm:$0xff] %v441_v57 }
  0xde   : > { %453 = vst [vmem:[%s248_s11 + $0x30] sm:$0xff] %v445_v58 }
  0xdf PF: > { %s15_s18 = sadd.s32 1, %s586_s18  }
  0xe0   : > { %p12_p4 = scmp.ge.s32.totalorder %s15_s18, 4  }
  0xe2   :  { %14 = sbr.rel (!%p12_p4) target bundleno = 1 (0x1), region = 73 }

// kernel: conv_block_forward.6
= control target key start
LH: loop header
LB: loop body
LE: loop exit
PB: predicated region body
PF: predicated region fallthrough
CT: control target
= control target key end

     0   :  { %s1053_s21 = smov 0   ;;  %s1384_s0 = inlined_call_operand.vmem [shape: f32[128,72], index: 0, kind: input, shape index: {}]   ;;  %s1385_s1 = inlined_call_operand.vmem [shape: f32[128,4], index: 1, kind: input, shape index: {}]   ;;  %s1386_s2 = inlined_call_operand.vmem [shape: f32[72,128], index: 2, kind: input, shape index: {}]   ;;  %s1387_s3 = inlined_call_operand.vmem [shape: f32[4,128], index: 3, kind: input, shape index: {}]   ;;  %s1388_s4 = inlined_call_operand.vmem [shape: f32[128,128], index: 4, kind: output, shape index: {0}]   ;;  %s1389_s5 = inlined_call_operand.vmem [shape: f32[16,128], index: 5, kind: output, shape index: {1}]   ;;  %s1390_s6 = inlined_call_operand.vmem [shape: f32[16,128], index: 6, kind: output, shape index: {2}]  }
   0x1 LB: > { %s1059_s22 = sadd.s32 4294967295, %s1016_s21   ;;  %p899_p0 = scmp.ge.s32.totalorder %s1016_s21, 1  ;;  %s1016_s21 = sphi %s1053_s21, %s17_s21  }
   0x2   : > { %p229_p1 = scmp.lt.s32.totalorder %s1016_s21, 3 }
   0x4   : > { %p230_p2 = pnand %p899_p0, %p229_p1 }
   0x5   : > { %s900_s27 = sshll.u32 (!%p230_p2), %s1059_s22, 3  ;;  %s925_s8 = sshll.u32 (!%p230_p2), %s1059_s22, 6 }
   0x6   : > { %233 = sbr.rel (%p230_p2) target bundleno = 290 (0x122), region = 36  ;;  %p273_p3 = scmp.lt.s32.totalorder (!%p230_p2), %s900_s27, 15 }
   0x7   : > { %s597_s11 = ssub.s32 (!%p230_p2), 128, %s925_s8  ;;  %p290_p5 = scmp.lt.s32.totalorder (!%p230_p2), %s1059_s22, 1 }
   0x8   : > { %p598_p4 = scmp.lt.s32.totalorder (!%p230_p2), %s597_s11, 64 }
   0xb   : > { %v314_v0 = vld [vmem:[%s1386_s2 + $0x40] sm:$0xff]  ;;  %v313_v1 = vld [vmem:[%s1386_s2 + $0x38] sm:$0xff]  ;;  %vm479_vm0 = vcmask 1043456   ;;  %v312_v3 = vld [vmem:[%s1386_s2 + $0x30] sm:$0xff]  ;;  %s1392_s27 = smov (!%p273_p3, %s900_s27), 15  ;;  %vm454_vm1 = vcmask 31744   ;;  %v600_v28 = vlaneseq }
   0xc   : > { %954 = vmatprep.subr.mxu0 %v314_v0  ;;  %v453_v2 = vld [vmem:[%s1387_s3] sm:$0xf]  ;;  %v311_v4 = vld [vmem:[%s1386_s2 + $0x28] sm:$0xff]  ;;  %s1080_s12 = sshll.u32 %s1392_s27, 3  ;;  %s1394_s11 = smov (!%p598_p4, %s597_s11), 64  ;;  %v309_v9 = vld [vmem:[%s1386_s2 + $0x18] sm:$0xff] }
   0xd   : > { %955 = vmatpush3.msra.mxu0 %v314_v0  ;;  %984 = vmatprep.subr.msk.mxu1 %vm479_vm0, %v453_v2  ;;  %s1086_s15 = scalar_lea.vmem %s1385_s1, %s1080_s12  ;;  %v310_v5 = vld [vmem:[%s1386_s2 + $0x20] sm:$0xff]  ;;  %s1095_s20 = scalar_lea.vmem %s1384_s0, %s1080_s12  ;;  %vm315_vm2 = vcmask 588800   ;;  %v308_v11 = vld [vmem:[%s1386_s2 + $0x10] sm:$0xff]  ;;  %v307_v15 = vld [vmem:[%s1386_s2 + $0x8] sm:$0xff]  ;;  %v1144_v29 = vshrl.u32 %v600_v28, 7  ;;  %v1150_v31 = vstv %s1394_s11 }
   0xe   : > { %956 = vmatprep.subr.mxu0 %v313_v1  ;;  %985 = vmatpush3.msk.msra.mxu1 %vm479_vm0, %v453_v2  ;;  %v445_v6 = vld [vmem:[%s1086_s15] sm:$0xff]  ;;  %v446_v7 = vld [vmem:[%s1086_s15 + $0x8] sm:$0xff]  ;;  %v447_v8 = vld [vmem:[%s1086_s15 + $0x10] sm:$0xff]  ;;  %s655_s25 = scvt.s32.f32 %s1394_s11  ;;  %s1204_s10 = scalar_lea.vmem %s1388_s4, %s1080_s12 }
   0xf   : > { %957 = vmatpush3.msra.mxu0 %v313_v1  ;;  %986 = vmatprep.mubr.msk.f32.mxu1 %vm454_vm1, %v445_v6  ;;  %v298_v10 = vld [vmem:[%s1095_s20] sm:$0xff]  ;;  %v448_v12 = vld [vmem:[%s1086_s15 + $0x18] sm:$0xff]  ;;  %v450_v17 = vld [vmem:[%s1086_s15 + $0x28] sm:$0xff]  ;;  %v1147_v30 = vadd.s32 8, %v1144_v29  ;;  %vm610_vm4 = vcmp.lt.s32.totalorder %v1144_v29, %v1150_v31  ;;  %v1159_v33 = vadd.s32 24, %v1144_v29  ;;  %v1162_v34 = vadd.s32 16, %v1144_v29 }
  0x10   : > { %958 = vmatprep.subr.mxu0 %v312_v3  ;;  %987 = vmatmul.mubr.msk.f32.vlgmr.msra.gmra.mxu1 %vm454_vm1, %v446_v7  ;;  %v449_v13 = vld [vmem:[%s1086_s15 + $0x20] sm:$0xff]  ;;  %v656_v14 = vstv %s655_s25  ;;  %v451_v18 = vld [vmem:[%s1086_s15 + $0x30] sm:$0xff]  ;;  %v299_v19 = vld [vmem:[%s1095_s20 + $0x8] sm:$0xff]  ;;  %v1175_v38 = vadd.s32 40, %v1144_v29  ;;  %v1184_v41 = vadd.s32 32, %v1144_v29  ;;  %v1209_v47 = vadd.s32 56, %v1144_v29 }
  0x11   : > { %959 = vmatpush3.msra.mxu0 %v312_v3  ;;  %989 = vmatprep.mubr.msk.f32.mxu1 %vm454_vm1, %v447_v8  ;;  %1008 = vrcp.f32 %v656_v14  ;;  %v306_v16 = vld [vmem:[%s1386_s2] sm:$0xff]  ;;  %v300_v20 = vld [vmem:[%s1095_s20 + $0x10] sm:$0xff]  ;;  %v452_v21 = vld [vmem:[%s1086_s15 + $0x38] sm:$0xff]  ;;  %vm611_vm3 = vcmp.lt.s32.totalorder %v1147_v30, %v1150_v31  ;;  %vm613_vm5 = vcmp.lt.s32.totalorder %v1159_v33, %v1150_v31  ;;  %vm612_vm6 = vcmp.lt.s32.totalorder %v1162_v34, %v1150_v31  ;;  %s1396_s22 = smov (!%p290_p5, %s1059_s22), 1 }
  0x12   : > { %960 = vmatprep.subr.mxu0 %v311_v4  ;;  %972 = vmatprep.mubr.msk.f32.mxu0 %vm315_vm2, %v298_v10  ;;  %v301_v22 = vld [vmem:[%s1095_s20 + $0x18] sm:$0xff]  ;;  %v302_v23 = vld [vmem:[%s1095_s20 + $0x20] sm:$0xff]  ;;  %v303_v24 = vld [vmem:[%s1095_s20 + $0x28] sm:$0xff]  ;;  %vm615_vm7 = vcmp.lt.s32.totalorder %v1175_v38, %v1150_v31  ;;  %vm614_vm8 = vcmp.lt.s32.totalorder %v1184_v41, %v1150_v31  ;;  %v1212_v48 = vadd.s32 48, %v1144_v29  ;;  %vm617_vm9 = vcmp.lt.s32.totalorder %v1209_v47, %v1150_v31  ;;  %s906_s12 = sshll.u32 %s1396_s22, 3 }
  0x13   : > { %961 = vmatpush3.msra.mxu0 %v311_v4  ;;  %v304_v26 = vld [vmem:[%s1095_s20 + $0x30] sm:$0xff]  ;;  %v305_v27 = vld [vmem:[%s1095_s20 + $0x38] sm:$0xff]  ;;  %vm699_vm11 = vcmp.eq.s32.totalorder %v1144_v29, 1  ;;  %vm698_vm12 = vcmp.eq.s32.totalorder %v1144_v29, 0  ;;  %s297_s15 = scalar_lea.vmem %s1390_s6, %s906_s12  ;;  %s293_s17 = scalar_lea.vmem %s1389_s5, %s906_s12 }
  0x14   : > { %962 = vmatprep.subr.mxu0 %v310_v5  ;;  %990 = vmatmul.mubr.msk.f32.gmra.mxu1 %vm454_vm1, %v448_v12  ;;  %vm616_vm10 = vcmp.lt.s32.totalorder %v1212_v48, %v1150_v31 }
  0x15   : > { %963 = vmatpush3.msra.mxu0 %v310_v5  ;;  %992 = vmatprep.mubr.msk.f32.mxu1 %vm454_vm1, %v449_v13 }
  0x16   : > { %964 = vmatprep.subr.mxu0 %v309_v9 }
  0x17   : > { %965 = vmatpush3.msra.mxu0 %v309_v9 }
  0x18   : > { %966 = vmatprep.subr.mxu0 %v308_v11  ;;  %993 = vmatmul.mubr.msk.f32.gmra.mxu1 %vm454_vm1, %v450_v17 }
  0x19   : > { %967 = vmatpush3.msra.mxu0 %v308_v11  ;;  %995 = vmatprep.mubr.msk.f32.mxu1 %vm454_vm1, %v451_v18 }
  0x1a   : > { %968 = vmatprep.subr.mxu0 %v307_v15 }
  0x1b   : > { %969 = vmatpush3.msra.mxu0 %v307_v15 }
  0x1c   : > { %970 = vmatprep.subr.mxu0 %v306_v16  ;;  %996 = vmatmul.mubr.msk.f32.gmra.mxu1 %vm454_vm1, %v452_v21 }
  0x1d   : > { %971 = vmatpush3.msra.mxu0 %v306_v16 }
  0x1e   : > { %973 = vmatmul.mubr.msk.f32.vlgmr.msra.gmra.mxu0 %vm315_vm2, %v299_v19  ;;  %v1009_v25 = vpop.eup %1008 }
  0x1f   : > { %975 = vmatprep.mubr.msk.f32.mxu0 %vm315_vm2, %v300_v20  ;;  %998 = vpush %v1009_v25 }
  0x22   : > { %976 = vmatmul.mubr.msk.f32.gmra.mxu0 %vm315_vm2, %v301_v22 }
  0x23   : > { %978 = vmatprep.mubr.msk.f32.mxu0 %vm315_vm2, %v302_v23 }
  0x26   : > { %979 = vmatmul.mubr.msk.f32.gmra.mxu0 %vm315_vm2, %v303_v24 }
  0x27   : > { %981 = vmatprep.mubr.msk.f32.mxu0 %vm315_vm2, %v304_v26 }
  0x2a   : > { %982 = vmatmul.mubr.msk.f32.gmra.mxu0 %vm315_vm2, %v305_v27 }
  0x50   : > { %s999_s11 = spop %998 }
  0x51   : > { %v659_v25 = vstv %s999_s11 }
  0xd0   : > { %v1154_v32 = vpop.f32.mrf.mxu1 }
  0xd1   : > { %v704_v35 = vsel %vm611_vm3, %v1154_v32, 0.0 }
  0xd2   : > { %v1168_v36 = vpop.f32.mrf.mxu1 }
  0xd3   : > { %v703_v37 = vsel %vm610_vm4, %v1168_v36, 0.0 }
  0xd4   : > { %v711_v39 = vadd.f32 %v704_v35, %v703_v37  ;;  %v1177_v40 = vpop.f32.mrf.mxu1 }
  0xd5   : > { %v706_v43 = vsel %vm613_vm5, %v1177_v40, 0.0 }
  0xd6   : > { %v1186_v42 = vpop.f32.mrf.mxu1 }
  0xd7   : > { %v705_v44 = vsel %vm612_vm6, %v1186_v42, 0.0 }
  0xd8   : > { %v712_v45 = vadd.f32 %v711_v39, %v705_v44  ;;  %v1198_v46 = vpop.f32.mrf.mxu1 }
  0xd9   : > { %v708_v52 = vsel %vm615_vm7, %v1198_v46, 0.0 }
  0xda   : > { %v1216_v50 = vpop.f32.mrf.mxu1  ;;  %v713_v51 = vadd.f32 %v712_v45, %v706_v43 }
  0xdb   : > { %v707_v53 = vsel %vm614_vm8, %v1216_v50, 0.0 }
  0xdc   : > { %v714_v54 = vadd.f32 %v713_v51, %v707_v53  ;;  %v1230_v56 = vpop.f32.mrf.mxu1 }
  0xdd   : > { %v710_v62 = vsel %vm617_vm9, %v1230_v56, 0.0 }
  0xde   : > { %v1214_v49 = vpop.f32.mrf.mxu0  ;;  %v1244_v59 = vpop.f32.mrf.mxu1  ;;  %v715_v60 = vadd.f32 %v714_v54, %v708_v52 }
  0xdf   : > { %589 = vst [vmem:[%s1204_s10 + $0x8] sm:$0xff] %v1214_v49  ;;  %v635_v61 = vsel %vm611_vm3, %v1214_v49, 0.0  ;;  %v709_v63 = vsel %vm616_vm10, %v1244_v59, 0.0 }
  0xe0   : > { %v1228_v55 = vpop.f32.mrf.mxu0  ;;  %v716_v1 = vadd.f32 %v715_v60, %v709_v63 }
  0xe1   : > { %588 = vst [vmem:[%s1204_s10] sm:$0xff] %v1228_v55  ;;  %v634_v57 = vsel %vm610_vm4, %v1228_v55, 0.0 }
  0xe2   : > { %v1242_v58 = vpop.f32.mrf.mxu0  ;;  %v642_v0 = vadd.f32 %v635_v61, %v634_v57  ;;  %v717_v4 = vadd.f32 %v716_v1, %v710_v62 }
  0xe3   : > { %591 = vst [vmem:[%s1204_s10 + $0x18] sm:$0xff] %v1242_v58  ;;  %v637_v7 = vsel %vm613_vm5, %v1242_v58, 0.0 }
  0xe4   : > { %v416_v2 = vpop.f32.mrf.mxu0  ;;  %v718_v8 = vrot.slane %v717_v4, 4 }
  0xe5   : > { %590 = vst [vmem:[%s1204_s10 + $0x10] sm:$0xff] %v416_v2  ;;  %v636_v3 = vsel %vm612_vm6, %v416_v2, 0.0 }
  0xe6   : > { %v643_v5 = vadd.f32 %v642_v0, %v636_v3  ;;  %v1264_v6 = vpop.f32.mrf.mxu0  ;;  %v719_v12 = vadd.f32 %v718_v8, %v717_v4 }
  0xe7   : > { %593 = vst [vmem:[%s1204_s10 + $0x28] sm:$0xff] %v1264_v6  ;;  %v639_v15 = vsel %vm615_vm7, %v1264_v6, 0.0 }
  0xe8   : > { %v1272_v9 = vpop.f32.mrf.mxu0  ;;  %v644_v10 = vadd.f32 %v643_v5, %v637_v7  ;;  %v720_v18 = vrot.slane %v719_v12, 2 }
  0xe9   : > { %592 = vst [vmem:[%s1204_s10 + $0x20] sm:$0xff] %v1272_v9  ;;  %v638_v11 = vsel %vm614_vm8, %v1272_v9, 0.0 }
  0xea   : > { %v645_v13 = vadd.f32 %v644_v10, %v638_v11  ;;  %v1280_v14 = vpop.f32.mrf.mxu0  ;;  %v721_v21 = vadd.f32 %v720_v18, %v719_v12 }
  0xeb   : > { %595 = vst [vmem:[%s1204_s10 + $0x38] sm:$0xff] %v1280_v14  ;;  %v641_v22 = vsel %vm617_vm9, %v1280_v14, 0.0 }
  0xec   : > { %v1288_v16 = vpop.f32.mrf.mxu0  ;;  %v646_v17 = vadd.f32 %v645_v13, %v639_v15  ;;  %v722_v24 = vrot.slane %v721_v21, 1 }
  0xed   : > { %594 = vst [vmem:[%s1204_s10 + $0x30] sm:$0xff] %v1288_v16  ;;  %v640_v19 = vsel %vm616_vm10, %v1288_v16, 0.0 }
  0xee   : > { %v647_v20 = vadd.f32 %v646_v17, %v640_v19  ;;  %v1300_v27 = vadd.f32 %v722_v24, %v721_v21 }
  0xf0   : > { %v648_v23 = vadd.f32 %v647_v20, %v641_v22  ;;  %v724_v35 = vmul.f32 %v1300_v27, %v659_v25 }
  0xf2   : > { %v649_v26 = vrot.slane %v648_v23, 4  ;;  %v725_v39 = vsub.f32 %v1168_v36, %v724_v35  ;;  %v726_v43 = vsub.f32 %v1154_v32, %v724_v35  ;;  %v727_v52 = vsub.f32 %v1186_v42, %v724_v35 }
  0xf3   : > { %v728_v36 = vsub.f32 %v1177_v40, %v724_v35  ;;  %v729_v63 = vsub.f32 %v1216_v50, %v724_v35  ;;  %v730_v5 = vsub.f32 %v1198_v46, %v724_v35  ;;  %v731_v46 = vsub.f32 %v1244_v59, %v724_v35 }
  0xf4   : > { %v650_v28 = vadd.f32 %v649_v26, %v648_v23  ;;  %v733_v45 = vsel %vm610_vm4, %v725_v39, 0.0  ;;  %v734_v51 = vsel %vm611_vm3, %v726_v43, 0.0  ;;  %v735_v32 = vsel %vm612_vm6, %v727_v52, 0.0 }
  0xf5   : > { %v741_v54 = vmul.f32 %v733_v45, %v733_v45  ;;  %v742_v57 = vmul.f32 %v734_v51, %v734_v51  ;;  %v743_v3 = vmul.f32 %v735_v32, %v735_v32  ;;  %v736_v40 = vsel %vm613_vm5, %v728_v36, 0.0 }
  0xf6   : > { %v651_v37 = vrot.slane %v650_v28, 2  ;;  %v744_v11 = vmul.f32 %v736_v40, %v736_v40  ;;  %v738_v34 = vsel %vm615_vm7, %v730_v5, 0.0  ;;  %v739_v33 = vsel %vm616_vm10, %v731_v46, 0.0 }
  0xf7   : > { %v749_v62 = vadd.f32 %v742_v57, %v741_v54  ;;  %v746_v20 = vmul.f32 %v738_v34, %v738_v34 }
  0xf8   : > { %v652_v44 = vadd.f32 %v651_v37, %v650_v28 }
  0xfa   : > { %v653_v53 = vrot.slane %v652_v44, 1 }
  0xfc   : > { %v1312_v60 = vadd.f32 %v653_v53, %v652_v44 }
  0xfe   : > { %v660_v61 = vmul.f32 %v659_v25, %v1312_v60  ;;  %v747_v25 = vmul.f32 %v739_v33, %v739_v33 }
 0x100   : > { %v661_v0 = vsub.f32 %v1228_v55, %v660_v61  ;;  %v662_v42 = vsub.f32 %v1214_v49, %v660_v61  ;;  %v663_v1 = vsub.f32 %v416_v2, %v660_v61  ;;  %v664_v4 = vsub.f32 %v1242_v58, %v660_v61 }
 0x101   : > { %v750_v55 = vadd.f32 %v749_v62, %v743_v3  ;;  %v665_v49 = vsub.f32 %v1272_v9, %v660_v61  ;;  %v737_v2 = vsel %vm614_vm8, %v729_v63, 0.0  ;;  %v666_v12 = vsub.f32 %v1264_v6, %v660_v61 }
 0x102   : > { %v669_v7 = vsel %vm610_vm4, %v661_v0, 0.0  ;;  %v670_v50 = vsel %vm611_vm3, %v662_v42, 0.0  ;;  %v671_v58 = vsel %vm612_vm6, %v663_v1, 0.0  ;;  %v672_v30 = vsel %vm613_vm5, %v664_v4, 0.0 }
 0x103   : > { %v677_v8 = vmul.f32 %v669_v7, %v669_v7  ;;  %v678_v10 = vmul.f32 %v670_v50, %v670_v50  ;;  %v732_v9 = vsub.f32 %v1230_v56, %v724_v35  ;;  %v679_v59 = vmul.f32 %v671_v58, %v671_v58 }
 0x104   : > { %v745_v15 = vmul.f32 %v737_v2, %v737_v2  ;;  %v751_v17 = vadd.f32 %v750_v55, %v744_v11  ;;  %v667_v18 = vsub.f32 %v1288_v16, %v660_v61  ;;  %v673_v6 = vsel %vm614_vm8, %v665_v49, 0.0 }
 0x105   : > { %v685_v13 = vadd.f32 %v678_v10, %v677_v8  ;;  %v680_v19 = vmul.f32 %v672_v30, %v672_v30  ;;  %v668_v22 = vsub.f32 %v1280_v14, %v660_v61  ;;  %v674_v23 = vsel %vm615_vm7, %v666_v12, 0.0 }
 0x106   : > { %v752_v21 = vadd.f32 %v751_v17, %v745_v15  ;;  %v740_v41 = vsel %vm617_vm9, %v732_v9, 0.0  ;;  %v681_v16 = vmul.f32 %v673_v6, %v673_v6  ;;  %v675_v28 = vsel %vm616_vm10, %v667_v18, 0.0 }
 0x107   : > { %v686_v56 = vadd.f32 %v685_v13, %v679_v59  ;;  %v682_v35 = vmul.f32 %v674_v23, %v674_v23  ;;  %v748_v37 = vmul.f32 %v740_v41, %v740_v41  ;;  %v676_v38 = vsel %vm617_vm9, %v668_v22, 0.0 }
 0x108   : > { %v753_v26 = vadd.f32 %v752_v21, %v746_v20  ;;  %v683_v43 = vmul.f32 %v675_v28, %v675_v28  ;;  %v684_v51 = vmul.f32 %v676_v38, %v676_v38 }
 0x109   : > { %v687_v24 = vadd.f32 %v686_v56, %v680_v19 }
 0x10a   : > { %v754_v39 = vadd.f32 %v753_v26, %v747_v25 }
 0x10b   : > { %v688_v14 = vadd.f32 %v687_v24, %v681_v16 }
 0x10c   : > { %v755_v45 = vadd.f32 %v754_v39, %v748_v37 }
 0x10d   : > { %v689_v44 = vadd.f32 %v688_v14, %v682_v35 }
 0x10e   : > { %v756_v53 = vrot.slane %v755_v45, 4 }
 0x10f   : > { %v690_v52 = vadd.f32 %v689_v44, %v683_v43 }
 0x110   : > { %v757_v57 = vadd.f32 %v756_v53, %v755_v45 }
 0x111   : > { %v691_v54 = vadd.f32 %v690_v52, %v684_v51 }
 0x112   : > { %v758_v36 = vrot.slane %v757_v57, 2 }
 0x113   : > { %v692_v48 = vrot.slane %v691_v54, 4 }
 0x114   : > { %v759_v61 = vadd.f32 %v758_v36, %v757_v57 }
 0x115   : > { %v693_v32 = vadd.f32 %v692_v48, %v691_v54 }
 0x116   : > { %v760_v63 = vrot.slane %v759_v61, 1 }
 0x117   : > { %v694_v62 = vrot.slane %v693_v32, 2 }
 0x118   : > { %v761_v47 = vadd.f32 %v760_v63, %v759_v61 }
 0x119   : > { %v695_v31 = vadd.f32 %v694_v62, %v693_v32 }
 0x11a   : > { %v762_v42 = vsel %vm699_vm11, %v761_v47, 0.0 }
 0x11b   : > { %v696_v0 = vrot.slane %v695_v31, 1  ;;  %v763_v1 = vsel %vm698_vm12, %v1300_v27, %v762_v42 }
 0x11c   : > { %764 = vst [vmem:[%s297_s15] sm:$0xff] %v763_v1 }
 0x11d   : > { %v697_v3 = vadd.f32 %v696_v0, %v695_v31 }
 0x11f   : > { %v700_v4 = vsel %vm699_vm11, %v697_v3, 0.0 }
 0x120   : > { %v701_v5 = vsel %vm698_vm12, %v1312_v60, %v700_v4 }
 0x121   : > { %702 = vst [vmem:[%s293_s17] sm:$0xff] %v701_v5 }
 0x122 PF: > { %s17_s21 = sadd.s32 1, %s1016_s21  }
 0x123   : > { %p14_p6 = scmp.ge.s32.totalorder %s17_s21, 4  }
 0x125   :  { %16 = sbr.rel (!%p14_p6) target bundleno = 1 (0x1), region = 93 }

</bundles_post_ra>
